<compile_context>
chip_gen: v7x
topology: tpu7x:2x2x1
jax: 0.10.0
libtpu: 0.0.40
codegen_flags: <defaults>
</compile_context>

<pallas_src>
import jax
import jax.numpy as jnp
from jax.experimental import pallas as pl
from jax.experimental.pallas import tpu as pltpu

# ---- model hyper-params (config.* stand-ins, consistent with the module) ----
STATE_IN = 64           # config.state_noise_dim
STATE_OUT = 64          # config.vae_embed_size
ACTION_HID = STATE_IN * 2
ACTION_OUT = 300        # self.action_out_size
ACTION_PAD = 384        # 3 * 128, lane-dense padded action width
LEAKY_SLOPE = 0.01      # nn.LeakyReLU() default
GUMBEL_EPS = 1e-20
NEG_BIG = -1e30         # padded-logit bias so argmax never lands in padding

# (name, in_dim, out_dim) for every nn.Linear actually used in forward()
# (self.last_layers is never called in forward(), so it is omitted)
PARAM_SPECS = [
    ("common_0", STATE_IN, STATE_IN), ("common_1", STATE_IN, STATE_IN),
    ("n1_0", STATE_IN, STATE_IN), ("n1_1", STATE_IN, STATE_IN),
    ("n2_0", STATE_IN, STATE_IN), ("n2_1", STATE_IN, STATE_IN),
    ("n3_0", STATE_IN, STATE_IN), ("n3_1", STATE_IN, STATE_IN),
    ("ag_0", STATE_IN, STATE_IN), ("ag_1", STATE_IN, ACTION_HID), ("ag_2", ACTION_HID, ACTION_OUT),
    ("dm_0", STATE_IN, STATE_OUT), ("dm_1", STATE_OUT, STATE_OUT),
    ("am_0", STATE_IN, STATE_OUT), ("am_1", STATE_OUT, STATE_OUT),
    ("sm_0", STATE_IN, STATE_OUT), ("sm_1", STATE_OUT, STATE_OUT),
    ("dv_0", STATE_IN, STATE_OUT), ("dv_1", STATE_OUT, STATE_OUT),
    ("av_0", STATE_IN, STATE_OUT), ("av_1", STATE_OUT, STATE_OUT),
    ("sv_0", STATE_IN, STATE_OUT), ("sv_1", STATE_OUT, STATE_OUT),
]

# MACs per batch row across the 9 fused MXU pushes (== packed weight element count)
MACS_PER_ROW = (2 * 64 * 64) + (64 * 256) + (192 * 192) + (64 * 128) \
               + (192 * 384) + (2 * 192 * 192) + (128 * 384)


# --------------------------- Pallas kernel ---------------------------------
def generator_kernel(s_z_ref, z_ref, g_ref, bias_ref,
                     w0a_ref, w0b_ref, w1_ref, w2n_ref, w2a_ref,
                     w3_ref, w4m_ref, w4v_ref, w5_ref,
                     state_out_ref, action_out_ref):
    f32 = jnp.float32
    bf16 = jnp.bfloat16
    bias = bias_ref[...]                                             # (16, 384) f32

    def lrelu(x, slope=LEAKY_SLOPE):
        return jnp.where(x >= 0, x, slope * x)

    def mm(x, w_ref):
        # bf16 operands, f32 accumulation on the MXU
        return jnp.dot(x.astype(bf16), w_ref[...], preferred_element_type=f32)

    s_z = s_z_ref[...]                                               # (TB, 64) f32

    # common_model: Linear(64,64)+LReLU, Linear(64,64)+LReLU
    h = lrelu(mm(s_z, w0a_ref) + bias[0:1, 0:64])
    s_z_emb = lrelu(mm(h, w0b_ref) + bias[1:2, 0:64])

    # stage 1: fused fan-out (TB,64)@(64,256)  cols: n1_0 | n2_0 | n3_0 | ag_0
    # per-column negative slope precomputed in slab row 9:
    #   LReLU(.01) | LReLU(.01) | LeakyReLU(True)->identity | ReLU
    h1 = mm(s_z_emb, w1_ref) + bias[2:3, 0:256]
    slope1 = bias[9:10, 0:256]
    h1 = jnp.where(h1 >= 0, h1, slope1 * h1)

    # stage 2a: noise second layers, block-diag (192,192) -> embs = [d|a|s], LReLU
    embs = lrelu(mm(h1[:, 0:192], w2n_ref) + bias[3:4, 0:192])
    # stage 2b: action hidden, dense (64,128) -> ReLU
    ag_hid = jnp.maximum(mm(h1[:, 192:256], w2a_ref) + bias[4:5, 0:128], 0.0)

    # stage 3: six head first layers fused (192,384) -> LReLU
    #          cols 0:192 = dm_0|am_0|sm_0 ; cols 192:384 = dv_0|av_0|sv_0
    h3 = lrelu(mm(embs, w3_ref) + bias[5:6, 0:384])

    # stage 4: head second layers, two block-diag (192,192) pushes (mean / var)
    mean_all = mm(h3[:, 0:192], w4m_ref) + bias[6:7, 0:192]          # [d_mean|a_mean|s_mean]
    var_all = mm(h3[:, 192:384], w4v_ref) + bias[7:8, 0:192]         # [d_var |a_var |s_var ]

    # reparameterization, concat-free state_rep = [z_d | z_a | z_s]
    state_out_ref[...] = (z_ref[...] * var_all + mean_all).astype(state_out_ref.dtype)

    # stage 5: ag_2 logits (TB,128)@(128,384)  (cols 300:384 biased to -1e30)
    logits = mm(ag_hid, w5_ref) + bias[8:9, 0:384]

    # gumbel-softmax hard=True forward value == one_hot(argmax(logits + g)).
    # Single lane reduction; no tie-break needed under continuous gumbel noise.
    y = logits + g_ref[...]
    ymax = jnp.max(y, axis=-1, keepdims=True)
    action_out_ref[...] = (y == ymax).astype(action_out_ref.dtype)


# --------------------------- host-side param init & packing ------------------
def init_params(key):
    params = {}
    keys = jax.random.split(key, len(PARAM_SPECS))
    for k, (name, din, dout) in zip(keys, PARAM_SPECS):
        kw, kb = jax.random.split(k)
        bound = 1.0 / jnp.sqrt(float(din))
        params[name + "_w"] = jax.random.uniform(kw, (din, dout), jnp.float32, -bound, bound)
        params[name + "_b"] = jax.random.uniform(kb, (1, dout), jnp.float32, -bound, bound)
    return params


def pack_params(params):
    """Fuse the 23 tiny Linear layers into 9 bf16 weight slabs + one f32 bias/slope slab."""
    def W(n):  return params[n + "_w"]
    def Bv(n): return params[n + "_b"]

    w0a = W("common_0")                              # (64, 64)
    w0b = W("common_1")                              # (64, 64)

    # stage 1: fan-out from s_z_emb -> (64, 256) : n1_0 | n2_0 | n3_0 | ag_0
    w1 = jnp.concatenate([W("n1_0"), W("n2_0"), W("n3_0"), W("ag_0")], axis=1)

    # stage 2a: noise second layers block-diag (192,192); stage 2b: ag_1 dense (64,128)
    w2n = (jnp.zeros((192, 192), jnp.float32)
           .at[0:64, 0:64].set(W("n1_1"))
           .at[64:128, 64:128].set(W("n2_1"))
           .at[128:192, 128:192].set(W("n3_1")))
    w2a = W("ag_1")

    # stage 3: head first layers (192, 384): means in cols 0:192, vars in cols 192:384
    w3 = (jnp.zeros((192, 384), jnp.float32)
          .at[0:64, 0:64].set(W("dm_0")).at[64:128, 64:128].set(W("am_0"))
          .at[128:192, 128:192].set(W("sm_0"))
          .at[0:64, 192:256].set(W("dv_0")).at[64:128, 256:320].set(W("av_0"))
          .at[128:192, 320:384].set(W("sv_0")))

    # stage 4: split into mean-half and var-half block-diag (192,192) each
    w4m = (jnp.zeros((192, 192), jnp.float32)
           .at[0:64, 0:64].set(W("dm_1")).at[64:128, 64:128].set(W("am_1"))
           .at[128:192, 128:192].set(W("sm_1")))
    w4v = (jnp.zeros((192, 192), jnp.float32)
           .at[0:64, 0:64].set(W("dv_1")).at[64:128, 64:128].set(W("av_1"))
           .at[128:192, 128:192].set(W("sv_1")))

    # stage 5: ag_2 padded to 384 output lanes
    w5 = jnp.zeros((ACTION_HID, ACTION_PAD), jnp.float32).at[:, 0:ACTION_OUT].set(W("ag_2"))

    # (16, 384) f32 bias + slope slab
    slab = jnp.zeros((16, ACTION_PAD), jnp.float32)
    rows = [
        (0, Bv("common_0")),
        (1, Bv("common_1")),
        (2, jnp.concatenate([Bv("n1_0"), Bv("n2_0"), Bv("n3_0"), Bv("ag_0")], axis=1)),
        (3, jnp.concatenate([Bv("n1_1"), Bv("n2_1"), Bv("n3_1")], axis=1)),
        (4, Bv("ag_1")),
        (5, jnp.concatenate([Bv("dm_0"), Bv("am_0"), Bv("sm_0"),
                             Bv("dv_0"), Bv("av_0"), Bv("sv_0")], axis=1)),
        (6, jnp.concatenate([Bv("dm_1"), Bv("am_1"), Bv("sm_1")], axis=1)),
        (7, jnp.concatenate([Bv("dv_1"), Bv("av_1"), Bv("sv_1")], axis=1)),
    ]
    for r, b in rows:
        slab = slab.at[r, 0:b.shape[-1]].set(b.reshape(-1))
    # row 8: ag_2 bias, padded lanes at -1e30 so argmax never lands in padding
    b5 = jnp.full((ACTION_PAD,), NEG_BIG, jnp.float32).at[0:ACTION_OUT].set(Bv("ag_2").reshape(-1))
    slab = slab.at[8, :].set(b5)
    # row 9: per-column negative slope for stage 1 (LReLU .01 | LReLU .01 | identity | ReLU)
    slope1 = jnp.concatenate([jnp.full((128,), LEAKY_SLOPE, jnp.float32),
                              jnp.full((64,), 1.0, jnp.float32),
                              jnp.zeros((64,), jnp.float32)])
    slab = slab.at[9, 0:256].set(slope1)

    cast = lambda w: w.astype(jnp.bfloat16)
    return dict(bias=slab, w0a=cast(w0a), w0b=cast(w0b), w1=cast(w1), w2n=cast(w2n),
                w2a=cast(w2a), w3=cast(w3), w4m=cast(w4m), w4v=cast(w4v), w5=cast(w5))


# --------------------------- wrapper ----------------------------------------
def woz_generator_forward(s_z, packed, rng_key, tb=512):
    B = s_z.shape[0]
    if B <= tb:
        TB, B_pad = B, B
    else:
        TB = tb
        B_pad = ((B + TB - 1) // TB) * TB
    grid = (B_pad // TB,)

    k1, k2 = jax.random.split(rng_key, 2)
    z_all = jax.random.normal(k1, (B_pad, 3 * STATE_OUT), jnp.float32)          # [z1|z2|z3]
    u = jax.random.uniform(k2, (B_pad, ACTION_PAD), jnp.float32)
    g = -jnp.log(-jnp.log(u + GUMBEL_EPS) + GUMBEL_EPS)                          # gumbel noise

    s_z_p = s_z if B_pad == B else jnp.pad(s_z, ((0, B_pad - B), (0, 0)))

    def row_block(width):
        return pl.BlockSpec((TB, width), lambda i: (i, 0))

    def resident(arr):
        # whole-array block, constant index map -> DMA'd once, VMEM-resident across grid
        return pl.BlockSpec(arr.shape, lambda i: (0, 0))

    weight_names = ["w0a", "w0b", "w1", "w2n", "w2a", "w3", "w4m", "w4v", "w5"]
    inputs = [s_z_p, z_all, g, packed["bias"]] + [packed[n] for n in weight_names]
    in_specs = ([row_block(STATE_IN), row_block(3 * STATE_OUT), row_block(ACTION_PAD),
                 resident(packed["bias"])]
                + [resident(packed[n]) for n in weight_names])

    flops = 2 * MACS_PER_ROW * B_pad
    bytes_accessed = (MACS_PER_ROW * 2 + 16 * 384 * 4
                      + B_pad * (64 + 192 + 384) * 4 + B_pad * (192 + 384) * 4)

    state_rep, action_pad = pl.pallas_call(
        generator_kernel,
        grid=grid,
        out_shape=(
            jax.ShapeDtypeStruct((B_pad, 3 * STATE_OUT), jnp.float32),
            jax.ShapeDtypeStruct((B_pad, ACTION_PAD), jnp.float32),
        ),
        in_specs=in_specs,
        out_specs=(row_block(3 * STATE_OUT), row_block(ACTION_PAD)),
        compiler_params=pltpu.CompilerParams(dimension_semantics=("parallel",)),
        cost_estimate=pl.CostEstimate(flops=flops, transcendentals=0,
                                      bytes_accessed=bytes_accessed),
    )(*inputs)
    return state_rep[:B], action_pad[:B, :ACTION_OUT], (z_all, g)


# --------------------------- pure-JAX reference (bf16-consistent) -------------
def reference_forward(s_z, params, z1, z2, z3, g):
    bf16, f32 = jnp.bfloat16, jnp.float32

    def lin(x, n):
        return jnp.dot(x.astype(bf16), params[n + "_w"].astype(bf16),
                       preferred_element_type=f32) + params[n + "_b"]

    def lrelu(x, s=LEAKY_SLOPE):
        return jnp.where(x >= 0, x, s * x)

    def mlp2(x, p0, p1, s0=LEAKY_SLOPE):
        return lrelu(lin(lrelu(lin(x, p0), s0), p1))

    s_z_emb = mlp2(s_z, "common_0", "common_1")
    d_emb = mlp2(s_z_emb, "n1_0", "n1_1")
    a_emb = mlp2(s_z_emb, "n2_0", "n2_1")
    s_emb = mlp2(s_z_emb, "n3_0", "n3_1", s0=1.0)   # nn.LeakyReLU(True) -> slope 1.0 (identity)

    def head(x, p0, p1):
        return lin(lrelu(lin(x, p0)), p1)

    z_d = z1 * head(d_emb, "dv_0", "dv_1") + head(d_emb, "dm_0", "dm_1")
    z_a = z2 * head(a_emb, "av_0", "av_1") + head(a_emb, "am_0", "am_1")
    z_s = z3 * head(s_emb, "sv_0", "sv_1") + head(s_emb, "sm_0", "sm_1")
    state_rep = jnp.concatenate([z_d, z_a, z_s], axis=-1)

    h = jnp.maximum(lin(s_z_emb, "ag_0"), 0.0)
    h = jnp.maximum(lin(h, "ag_1"), 0.0)
    logits = lin(h, "ag_2")
    idx = jnp.argmax(logits + g, axis=-1)
    action_rep = jax.nn.one_hot(idx, ACTION_OUT, dtype=jnp.float32)
    return state_rep, action_rep


# --------------------------- main --------------------------------------------
if __name__ == "__main__":
    B = 8
    root = jax.random.PRNGKey(0)
    k_param, k_in, k_noise = jax.random.split(root, 3)

    params = init_params(k_param)
    packed = pack_params(params)
    s_z = jax.random.normal(k_in, (B, STATE_IN), jnp.float32)

    fwd = jax.jit(woz_generator_forward)
    state_rep, action_rep, (z_all, g) = fwd(s_z, packed, k_noise)
    state_rep, action_rep, z_all, g = jax.block_until_ready((state_rep, action_rep, z_all, g))

    z1 = z_all[:B, 0:STATE_OUT]
    z2 = z_all[:B, STATE_OUT:2 * STATE_OUT]
    z3 = z_all[:B, 2 * STATE_OUT:3 * STATE_OUT]
    ref_state, ref_action = reference_forward(s_z, params, z1, z2, z3, g[:B, :ACTION_OUT])

    assert state_rep.shape == (B, 3 * STATE_OUT) and action_rep.shape == (B, ACTION_OUT)
    assert jnp.allclose(state_rep, ref_state, atol=2e-3, rtol=2e-3)
    assert bool(jnp.all(jnp.argmax(action_rep, -1) == jnp.argmax(ref_action, -1)))
    assert jnp.allclose(jnp.sum(action_rep, axis=-1), 1.0)  # hard one-hot

    print("KERNEL_OK")
</pallas_src>

<mosaic_0001>
module attributes {stable_mosaic.version = 11 : i64} {
  func.func @generator_kernel(%arg0: i32, %arg1: memref<8x64xf32, #tpu.memory_space<vmem>>, %arg2: memref<8x192xf32, #tpu.memory_space<vmem>>, %arg3: memref<8x384xf32, #tpu.memory_space<vmem>>, %arg4: memref<16x384xf32, #tpu.memory_space<vmem>>, %arg5: memref<64x64xbf16, #tpu.memory_space<vmem>>, %arg6: memref<64x64xbf16, #tpu.memory_space<vmem>>, %arg7: memref<64x256xbf16, #tpu.memory_space<vmem>>, %arg8: memref<192x192xbf16, #tpu.memory_space<vmem>>, %arg9: memref<64x128xbf16, #tpu.memory_space<vmem>>, %arg10: memref<192x384xbf16, #tpu.memory_space<vmem>>, %arg11: memref<192x192xbf16, #tpu.memory_space<vmem>>, %arg12: memref<192x192xbf16, #tpu.memory_space<vmem>>, %arg13: memref<128x384xbf16, #tpu.memory_space<vmem>>, %arg14: memref<8x192xf32, #tpu.memory_space<vmem>>, %arg15: memref<8x384xf32, #tpu.memory_space<vmem>>) attributes {dimension_semantics = [#tpu.dimension_semantics<parallel>], iteration_bounds = array<i64: 1>, scalar_prefetch = 0 : i64, scratch_operands = 0 : i64, tpu.core_type = #tpu.core_type<tc>, window_params = [{transform_indices = @transform_0, window_bounds = array<i64: 8, 64>}, {transform_indices = @transform_1, window_bounds = array<i64: 8, 192>}, {transform_indices = @transform_2, window_bounds = array<i64: 8, 384>}, {pipeline_mode = #tpu.pipeline_mode<synchronous>, transform_indices = @transform_3, window_bounds = array<i64: 16, 384>}, {pipeline_mode = #tpu.pipeline_mode<synchronous>, transform_indices = @transform_4, window_bounds = array<i64: 64, 64>}, {pipeline_mode = #tpu.pipeline_mode<synchronous>, transform_indices = @transform_5, window_bounds = array<i64: 64, 64>}, {pipeline_mode = #tpu.pipeline_mode<synchronous>, transform_indices = @transform_6, window_bounds = array<i64: 64, 256>}, {pipeline_mode = #tpu.pipeline_mode<synchronous>, transform_indices = @transform_7, window_bounds = array<i64: 192, 192>}, {pipeline_mode = #tpu.pipeline_mode<synchronous>, transform_indices = @transform_8, window_bounds = array<i64: 64, 128>}, {pipeline_mode = #tpu.pipeline_mode<synchronous>, transform_indices = @transform_9, window_bounds = array<i64: 192, 384>}, {pipeline_mode = #tpu.pipeline_mode<synchronous>, transform_indices = @transform_10, window_bounds = array<i64: 192, 192>}, {pipeline_mode = #tpu.pipeline_mode<synchronous>, transform_indices = @transform_11, window_bounds = array<i64: 192, 192>}, {pipeline_mode = #tpu.pipeline_mode<synchronous>, transform_indices = @transform_12, window_bounds = array<i64: 128, 384>}, {transform_indices = @transform_13, window_bounds = array<i64: 8, 192>}, {transform_indices = @transform_14, window_bounds = array<i64: 8, 384>}]} {
    %c0 = arith.constant 0 : index
    %c0_0 = arith.constant 0 : index
    %0 = vector.load %arg4[%c0, %c0_0] : memref<16x384xf32, #tpu.memory_space<vmem>>, vector<16x384xf32>
    %c0_1 = arith.constant 0 : index
    %c0_2 = arith.constant 0 : index
    %1 = vector.load %arg1[%c0_1, %c0_2] : memref<8x64xf32, #tpu.memory_space<vmem>>, vector<8x64xf32>
    %2 = arith.truncf %1 : vector<8x64xf32> to vector<8x64xbf16>
    %c0_3 = arith.constant 0 : index
    %c0_4 = arith.constant 0 : index
    %3 = vector.load %arg5[%c0_3, %c0_4] : memref<64x64xbf16, #tpu.memory_space<vmem>>, vector<64x64xbf16>
    %cst = arith.constant dense<0.000000e+00> : vector<8x64xf32>
    %4 = tpu.matmul %2, %3, %cst {dimension_numbers = #tpu.dot_dimension_numbers<[1], [0], [0], [1], [0, 0, 1, 1], [], []>} : vector<8x64xbf16>, vector<64x64xbf16>, vector<8x64xf32> -> vector<8x64xf32>
    %5 = vector.extract_strided_slice %0 {offsets = [0, 0], sizes = [1, 64], strides = [1, 1]} : vector<16x384xf32> to vector<1x64xf32>
    %6 = vector.broadcast %5 : vector<1x64xf32> to vector<8x64xf32>
    %7 = arith.addf %4, %6 : vector<8x64xf32>
    %cst_5 = arith.constant 0.000000e+00 : f32
    %8 = vector.broadcast %cst_5 : f32 to vector<8x64xf32>
    %9 = arith.cmpf oge, %7, %8 : vector<8x64xf32>
    %cst_6 = arith.constant 0.00999999977 : f32
    %10 = vector.broadcast %cst_6 : f32 to vector<8x64xf32>
    %11 = arith.mulf %10, %7 : vector<8x64xf32>
    %12 = arith.select %9, %7, %11 : vector<8x64xi1>, vector<8x64xf32>
    %13 = arith.truncf %12 : vector<8x64xf32> to vector<8x64xbf16>
    %c0_7 = arith.constant 0 : index
    %c0_8 = arith.constant 0 : index
    %14 = vector.load %arg6[%c0_7, %c0_8] : memref<64x64xbf16, #tpu.memory_space<vmem>>, vector<64x64xbf16>
    %cst_9 = arith.constant dense<0.000000e+00> : vector<8x64xf32>
    %15 = tpu.matmul %13, %14, %cst_9 {dimension_numbers = #tpu.dot_dimension_numbers<[1], [0], [0], [1], [0, 0, 1, 1], [], []>} : vector<8x64xbf16>, vector<64x64xbf16>, vector<8x64xf32> -> vector<8x64xf32>
    %16 = vector.extract_strided_slice %0 {offsets = [1, 0], sizes = [1, 64], strides = [1, 1]} : vector<16x384xf32> to vector<1x64xf32>
    %17 = vector.broadcast %16 : vector<1x64xf32> to vector<8x64xf32>
    %18 = arith.addf %15, %17 : vector<8x64xf32>
    %cst_10 = arith.constant 0.000000e+00 : f32
    %19 = vector.broadcast %cst_10 : f32 to vector<8x64xf32>
    %20 = arith.cmpf oge, %18, %19 : vector<8x64xf32>
    %cst_11 = arith.constant 0.00999999977 : f32
    %21 = vector.broadcast %cst_11 : f32 to vector<8x64xf32>
    %22 = arith.mulf %21, %18 : vector<8x64xf32>
    %23 = arith.select %20, %18, %22 : vector<8x64xi1>, vector<8x64xf32>
    %24 = arith.truncf %23 : vector<8x64xf32> to vector<8x64xbf16>
    %c0_12 = arith.constant 0 : index
    %c0_13 = arith.constant 0 : index
    %25 = vector.load %arg7[%c0_12, %c0_13] : memref<64x256xbf16, #tpu.memory_space<vmem>>, vector<64x256xbf16>
    %cst_14 = arith.constant dense<0.000000e+00> : vector<8x256xf32>
    %26 = tpu.matmul %24, %25, %cst_14 {dimension_numbers = #tpu.dot_dimension_numbers<[1], [0], [0], [1], [0, 0, 1, 1], [], []>} : vector<8x64xbf16>, vector<64x256xbf16>, vector<8x256xf32> -> vector<8x256xf32>
    %27 = vector.extract_strided_slice %0 {offsets = [2, 0], sizes = [1, 256], strides = [1, 1]} : vector<16x384xf32> to vector<1x256xf32>
    %28 = vector.broadcast %27 : vector<1x256xf32> to vector<8x256xf32>
    %29 = arith.addf %26, %28 : vector<8x256xf32>
    %30 = vector.extract_strided_slice %0 {offsets = [9, 0], sizes = [1, 256], strides = [1, 1]} : vector<16x384xf32> to vector<1x256xf32>
    %cst_15 = arith.constant 0.000000e+00 : f32
    %31 = vector.broadcast %cst_15 : f32 to vector<8x256xf32>
    %32 = arith.cmpf oge, %29, %31 : vector<8x256xf32>
    %33 = vector.broadcast %30 : vector<1x256xf32> to vector<8x256xf32>
    %34 = arith.mulf %33, %29 : vector<8x256xf32>
    %35 = arith.select %32, %29, %34 : vector<8x256xi1>, vector<8x256xf32>
    %36 = vector.extract_strided_slice %35 {offsets = [0, 0], sizes = [8, 192], strides = [1, 1]} : vector<8x256xf32> to vector<8x192xf32>
    %37 = arith.truncf %36 : vector<8x192xf32> to vector<8x192xbf16>
    %c0_16 = arith.constant 0 : index
    %c0_17 = arith.constant 0 : index
    %38 = vector.load %arg8[%c0_16, %c0_17] : memref<192x192xbf16, #tpu.memory_space<vmem>>, vector<192x192xbf16>
    %cst_18 = arith.constant dense<0.000000e+00> : vector<8x192xf32>
    %39 = tpu.matmul %37, %38, %cst_18 {dimension_numbers = #tpu.dot_dimension_numbers<[1], [0], [0], [1], [0, 0, 1, 1], [], []>} : vector<8x192xbf16>, vector<192x192xbf16>, vector<8x192xf32> -> vector<8x192xf32>
    %40 = vector.extract_strided_slice %0 {offsets = [3, 0], sizes = [1, 192], strides = [1, 1]} : vector<16x384xf32> to vector<1x192xf32>
    %41 = vector.broadcast %40 : vector<1x192xf32> to vector<8x192xf32>
    %42 = arith.addf %39, %41 : vector<8x192xf32>
    %cst_19 = arith.constant 0.000000e+00 : f32
    %43 = vector.broadcast %cst_19 : f32 to vector<8x192xf32>
    %44 = arith.cmpf oge, %42, %43 : vector<8x192xf32>
    %cst_20 = arith.constant 0.00999999977 : f32
    %45 = vector.broadcast %cst_20 : f32 to vector<8x192xf32>
    %46 = arith.mulf %45, %42 : vector<8x192xf32>
    %47 = arith.select %44, %42, %46 : vector<8x192xi1>, vector<8x192xf32>
    %48 = vector.extract_strided_slice %35 {offsets = [0, 192], sizes = [8, 64], strides = [1, 1]} : vector<8x256xf32> to vector<8x64xf32>
    %49 = arith.truncf %48 : vector<8x64xf32> to vector<8x64xbf16>
    %c0_21 = arith.constant 0 : index
    %c0_22 = arith.constant 0 : index
    %50 = vector.load %arg9[%c0_21, %c0_22] : memref<64x128xbf16, #tpu.memory_space<vmem>>, vector<64x128xbf16>
    %cst_23 = arith.constant dense<0.000000e+00> : vector<8x128xf32>
    %51 = tpu.matmul %49, %50, %cst_23 {dimension_numbers = #tpu.dot_dimension_numbers<[1], [0], [0], [1], [0, 0, 1, 1], [], []>} : vector<8x64xbf16>, vector<64x128xbf16>, vector<8x128xf32> -> vector<8x128xf32>
    %52 = vector.extract_strided_slice %0 {offsets = [4, 0], sizes = [1, 128], strides = [1, 1]} : vector<16x384xf32> to vector<1x128xf32>
    %53 = vector.broadcast %52 : vector<1x128xf32> to vector<8x128xf32>
    %54 = arith.addf %51, %53 : vector<8x128xf32>
    %cst_24 = arith.constant 0.000000e+00 : f32
    %55 = vector.broadcast %cst_24 : f32 to vector<8x128xf32>
    %56 = arith.maximumf %54, %55 : vector<8x128xf32>
    %57 = arith.truncf %47 : vector<8x192xf32> to vector<8x192xbf16>
    %c0_25 = arith.constant 0 : index
    %c0_26 = arith.constant 0 : index
    %58 = vector.load %arg10[%c0_25, %c0_26] : memref<192x384xbf16, #tpu.memory_space<vmem>>, vector<192x384xbf16>
    %cst_27 = arith.constant dense<0.000000e+00> : vector<8x384xf32>
    %59 = tpu.matmul %57, %58, %cst_27 {dimension_numbers = #tpu.dot_dimension_numbers<[1], [0], [0], [1], [0, 0, 1, 1], [], []>} : vector<8x192xbf16>, vector<192x384xbf16>, vector<8x384xf32> -> vector<8x384xf32>
    %60 = vector.extract_strided_slice %0 {offsets = [5, 0], sizes = [1, 384], strides = [1, 1]} : vector<16x384xf32> to vector<1x384xf32>
    %61 = vector.broadcast %60 : vector<1x384xf32> to vector<8x384xf32>
    %62 = arith.addf %59, %61 : vector<8x384xf32>
    %cst_28 = arith.constant 0.000000e+00 : f32
    %63 = vector.broadcast %cst_28 : f32 to vector<8x384xf32>
    %64 = arith.cmpf oge, %62, %63 : vector<8x384xf32>
    %cst_29 = arith.constant 0.00999999977 : f32
    %65 = vector.broadcast %cst_29 : f32 to vector<8x384xf32>
    %66 = arith.mulf %65, %62 : vector<8x384xf32>
    %67 = arith.select %64, %62, %66 : vector<8x384xi1>, vector<8x384xf32>
    %68 = vector.extract_strided_slice %67 {offsets = [0, 0], sizes = [8, 192], strides = [1, 1]} : vector<8x384xf32> to vector<8x192xf32>
    %69 = arith.truncf %68 : vector<8x192xf32> to vector<8x192xbf16>
    %c0_30 = arith.constant 0 : index
    %c0_31 = arith.constant 0 : index
    %70 = vector.load %arg11[%c0_30, %c0_31] : memref<192x192xbf16, #tpu.memory_space<vmem>>, vector<192x192xbf16>
    %cst_32 = arith.constant dense<0.000000e+00> : vector<8x192xf32>
    %71 = tpu.matmul %69, %70, %cst_32 {dimension_numbers = #tpu.dot_dimension_numbers<[1], [0], [0], [1], [0, 0, 1, 1], [], []>} : vector<8x192xbf16>, vector<192x192xbf16>, vector<8x192xf32> -> vector<8x192xf32>
    %72 = vector.extract_strided_slice %0 {offsets = [6, 0], sizes = [1, 192], strides = [1, 1]} : vector<16x384xf32> to vector<1x192xf32>
    %73 = vector.broadcast %72 : vector<1x192xf32> to vector<8x192xf32>
    %74 = arith.addf %71, %73 : vector<8x192xf32>
    %75 = vector.extract_strided_slice %67 {offsets = [0, 192], sizes = [8, 192], strides = [1, 1]} : vector<8x384xf32> to vector<8x192xf32>
    %76 = arith.truncf %75 : vector<8x192xf32> to vector<8x192xbf16>
    %c0_33 = arith.constant 0 : index
    %c0_34 = arith.constant 0 : index
    %77 = vector.load %arg12[%c0_33, %c0_34] : memref<192x192xbf16, #tpu.memory_space<vmem>>, vector<192x192xbf16>
    %cst_35 = arith.constant dense<0.000000e+00> : vector<8x192xf32>
    %78 = tpu.matmul %76, %77, %cst_35 {dimension_numbers = #tpu.dot_dimension_numbers<[1], [0], [0], [1], [0, 0, 1, 1], [], []>} : vector<8x192xbf16>, vector<192x192xbf16>, vector<8x192xf32> -> vector<8x192xf32>
    %79 = vector.extract_strided_slice %0 {offsets = [7, 0], sizes = [1, 192], strides = [1, 1]} : vector<16x384xf32> to vector<1x192xf32>
    %80 = vector.broadcast %79 : vector<1x192xf32> to vector<8x192xf32>
    %81 = arith.addf %78, %80 : vector<8x192xf32>
    %c0_36 = arith.constant 0 : index
    %c0_37 = arith.constant 0 : index
    %82 = vector.load %arg2[%c0_36, %c0_37] : memref<8x192xf32, #tpu.memory_space<vmem>>, vector<8x192xf32>
    %83 = arith.mulf %82, %81 : vector<8x192xf32>
    %84 = arith.addf %83, %74 : vector<8x192xf32>
    %c0_38 = arith.constant 0 : index
    %c0_39 = arith.constant 0 : index
    %85 = vector.load %arg14[%c0_38, %c0_39] : memref<8x192xf32, #tpu.memory_space<vmem>>, vector<8x192xf32>
    tpu.vector_store %arg14[%c0_38, %c0_39], %84 {strides = array<i32>} : memref<8x192xf32, #tpu.memory_space<vmem>>, vector<8x192xf32>,
    %86 = arith.truncf %56 : vector<8x128xf32> to vector<8x128xbf16>
    %c0_40 = arith.constant 0 : index
    %c0_41 = arith.constant 0 : index
    %87 = vector.load %arg13[%c0_40, %c0_41] : memref<128x384xbf16, #tpu.memory_space<vmem>>, vector<128x384xbf16>
    %cst_42 = arith.constant dense<0.000000e+00> : vector<8x384xf32>
    %88 = tpu.matmul %86, %87, %cst_42 {dimension_numbers = #tpu.dot_dimension_numbers<[1], [0], [0], [1], [0, 0, 1, 1], [], []>} : vector<8x128xbf16>, vector<128x384xbf16>, vector<8x384xf32> -> vector<8x384xf32>
    %89 = vector.extract_strided_slice %0 {offsets = [8, 0], sizes = [1, 384], strides = [1, 1]} : vector<16x384xf32> to vector<1x384xf32>
    %90 = vector.broadcast %89 : vector<1x384xf32> to vector<8x384xf32>
    %91 = arith.addf %88, %90 : vector<8x384xf32>
    %c0_43 = arith.constant 0 : index
    %c0_44 = arith.constant 0 : index
    %92 = vector.load %arg3[%c0_43, %c0_44] : memref<8x384xf32, #tpu.memory_space<vmem>>, vector<8x384xf32>
    %93 = arith.addf %91, %92 : vector<8x384xf32>
    %cst_45 = arith.constant dense<0xFF800000> : vector<8xf32>
    %94 = vector.multi_reduction <maximumf>, %93, %cst_45 [1] : vector<8x384xf32> to vector<8xf32>
    %95 = vector.shape_cast %94 : vector<8xf32> to vector<8x1xf32>
    %96 = vector.broadcast %95 : vector<8x1xf32> to vector<8x384xf32>
    %97 = arith.cmpf oeq, %93, %96 : vector<8x384xf32>
    %98 = arith.extui %97 : vector<8x384xi1> to vector<8x384xi32>
    %99 = arith.sitofp %98 : vector<8x384xi32> to vector<8x384xf32>
    %c0_46 = arith.constant 0 : index
    %c0_47 = arith.constant 0 : index
    %100 = vector.load %arg15[%c0_46, %c0_47] : memref<8x384xf32, #tpu.memory_space<vmem>>, vector<8x384xf32>
    tpu.vector_store %arg15[%c0_46, %c0_47], %99 {strides = array<i32>} : memref<8x384xf32, #tpu.memory_space<vmem>>, vector<8x384xf32>,
    return
  }
  func.func @transform_0(%arg0: i32) -> (i32, i32) {
    %c0_i32 = arith.constant 0 : i32
    %c0_i32_0 = arith.constant 0 : i32
    return %arg0, %c0_i32 : i32, i32
  }
  func.func @transform_1(%arg0: i32) -> (i32, i32) {
    %c0_i32 = arith.constant 0 : i32
    %c0_i32_0 = arith.constant 0 : i32
    return %arg0, %c0_i32 : i32, i32
  }
  func.func @transform_2(%arg0: i32) -> (i32, i32) {
    %c0_i32 = arith.constant 0 : i32
    %c0_i32_0 = arith.constant 0 : i32
    return %arg0, %c0_i32 : i32, i32
  }
  func.func @transform_3(%arg0: i32) -> (i32, i32) {
    %c0_i32 = arith.constant 0 : i32
    %c0_i32_0 = arith.constant 0 : i32
    %c0_i32_1 = arith.constant 0 : i32
    return %c0_i32, %c0_i32_0 : i32, i32
  }
  func.func @transform_4(%arg0: i32) -> (i32, i32) {
    %c0_i32 = arith.constant 0 : i32
    %c0_i32_0 = arith.constant 0 : i32
    %c0_i32_1 = arith.constant 0 : i32
    return %c0_i32, %c0_i32_0 : i32, i32
  }
  func.func @transform_5(%arg0: i32) -> (i32, i32) {
    %c0_i32 = arith.constant 0 : i32
    %c0_i32_0 = arith.constant 0 : i32
    %c0_i32_1 = arith.constant 0 : i32
    return %c0_i32, %c0_i32_0 : i32, i32
  }
  func.func @transform_6(%arg0: i32) -> (i32, i32) {
    %c0_i32 = arith.constant 0 : i32
    %c0_i32_0 = arith.constant 0 : i32
    %c0_i32_1 = arith.constant 0 : i32
    return %c0_i32, %c0_i32_0 : i32, i32
  }
  func.func @transform_7(%arg0: i32) -> (i32, i32) {
    %c0_i32 = arith.constant 0 : i32
    %c0_i32_0 = arith.constant 0 : i32
    %c0_i32_1 = arith.constant 0 : i32
    return %c0_i32, %c0_i32_0 : i32, i32
  }
  func.func @transform_8(%arg0: i32) -> (i32, i32) {
    %c0_i32 = arith.constant 0 : i32
    %c0_i32_0 = arith.constant 0 : i32
    %c0_i32_1 = arith.constant 0 : i32
    return %c0_i32, %c0_i32_0 : i32, i32
  }
  func.func @transform_9(%arg0: i32) -> (i32, i32) {
    %c0_i32 = arith.constant 0 : i32
    %c0_i32_0 = arith.constant 0 : i32
    %c0_i32_1 = arith.constant 0 : i32
    return %c0_i32, %c0_i32_0 : i32, i32
  }
  func.func @transform_10(%arg0: i32) -> (i32, i32) {
    %c0_i32 = arith.constant 0 : i32
    %c0_i32_0 = arith.constant 0 : i32
    %c0_i32_1 = arith.constant 0 : i32
    return %c0_i32, %c0_i32_0 : i32, i32
  }
  func.func @transform_11(%arg0: i32) -> (i32, i32) {
    %c0_i32 = arith.constant 0 : i32
    %c0_i32_0 = arith.constant 0 : i32
    %c0_i32_1 = arith.constant 0 : i32
    return %c0_i32, %c0_i32_0 : i32, i32
  }
  func.func @transform_12(%arg0: i32) -> (i32, i32) {
    %c0_i32 = arith.constant 0 : i32
    %c0_i32_0 = arith.constant 0 : i32
    %c0_i32_1 = arith.constant 0 : i32
    return %c0_i32, %c0_i32_0 : i32, i32
  }
  func.func @transform_13(%arg0: i32) -> (i32, i32) {
    %c0_i32 = arith.constant 0 : i32
    %c0_i32_0 = arith.constant 0 : i32
    return %arg0, %c0_i32 : i32, i32
  }
  func.func @transform_14(%arg0: i32) -> (i32, i32) {
    %c0_i32 = arith.constant 0 : i32
    %c0_i32_0 = arith.constant 0 : i32
    return %arg0, %c0_i32 : i32, i32
  }
}

</mosaic_0001>

<bundles_post_ra>
// kernel: woz_generator_forward.3
= control target key start
LH: loop header
LB: loop body
LE: loop exit
PB: predicated region body
PF: predicated region fallthrough
CT: control target
= control target key end

     0   :  { %20 = vsyncpa [#allocation3], 0  ;;  %s2995_s0 = inlined_call_operand.vmem [shape: f32[8,64], index: 0, kind: input, shape index: {}]   ;;  %s2996_s1 = inlined_call_operand.vmem [shape: f32[8,192], index: 1, kind: input, shape index: {}]   ;;  %s2997_s2 = inlined_call_operand.vmem [shape: f32[8,384], index: 2, kind: input, shape index: {}]   ;;  %s2998_s3 = inlined_call_operand.hbm [shape: f32[16,384], index: 3, kind: input, shape index: {}]   ;;  %s2999_s4 = inlined_call_operand.hbm [shape: bf16[64,64], index: 4, kind: input, shape index: {}]   ;;  %s3000_s5 = inlined_call_operand.hbm [shape: bf16[64,64], index: 5, kind: input, shape index: {}]   ;;  %s3001_s6 = inlined_call_operand.hbm [shape: bf16[64,256], index: 6, kind: input, shape index: {}]   ;;  %s3002_s7 = inlined_call_operand.vmem [shape: bf16[192,192], index: 7, kind: input, shape index: {}]   ;;  %s3003_s8 = inlined_call_operand.hbm [shape: bf16[64,128], index: 8, kind: input, shape index: {}]   ;;  %s3004_s9 = inlined_call_operand.hbm [shape: bf16[192,384], index: 9, kind: input, shape index: {}]   ;;  %s3005_s10 = inlined_call_operand.hbm [shape: bf16[192,192], index: 10, kind: input, shape index: {}]   ;;  %s3006_s11 = inlined_call_operand.hbm [shape: bf16[192,192], index: 11, kind: input, shape index: {}]   ;;  %s3007_s12 = inlined_call_operand.hbm [shape: bf16[128,384], index: 12, kind: input, shape index: {}]   ;;  %s3008_s13 = inlined_call_operand.hbm [shape: f32[8,192], index: 13, kind: output, shape index: {0}]   ;;  %s3009_s14 = inlined_call_operand.hbm [shape: f32[8,384], index: 14, kind: output, shape index: {1}]  }
   0x1   :  { %21 = vsyncpa [#allocation6], 0 }
   0x2   :  { %22 = vsyncpa [#allocation9], 0 }
   0x3   :  { %23 = vsyncpa [#allocation12], 0 }
   0x4   :  { %24 = vsyncpa [#allocation15], 0 }
   0x5   :  { %25 = vsyncpa [#allocation4], 0 }
   0x6   :  { %26 = vsyncpa [#allocation19], 0  ;;  %s2549_s29 = smov [#allocation5]   ;;  %s2293_s17 = scalar_lea.hbm %s2999_s4, 512 }
   0x7   :  { %s50_s30 = sshll.u32 %s2549_s29, 4  ;;  %p2294_p0 = scmp.ne.s32.totalorder %s2999_s4, %s2293_s17  ;;  %s51_s30 = int_to_ptr.vmem [resolvable:$true] %s50_s30 }
   0x8   :  { %p2297_p1 = scmp.lt.u32.totalorder %s2293_s17, %s2999_s4 }
   0xa   :  { %p2299_p2 = pnand %p2297_p1, %p2294_p0 }
   0xc   :  { %2302 = shalt.err (!%p2299_p2)
}
   0xd   :  { %s2303_s22 = scalar_lea.vmem %s51_s30, 512  ;;  %p2308_p4 = scmp.lt.s32.totalorder %s51_s30, %s51_s30 }
   0xe   :  { %p2304_p3 = scmp.ne.s32.totalorder %s51_s30, %s2303_s22  ;;  %p2309_p5 = scmp.lt.s32.totalorder %s2303_s22, %s2303_s22 }
  0x10   :  { %p2310_p6 = por %p2309_p5, %p2308_p4 }
  0x12   :  { %p2311_p7 = pnand %p2310_p6, %p2304_p3 }
  0x14   :  { %2314 = shalt.err (!%p2311_p7)
}
  0x15   :  { %s3010_s23 = smov 64   ;;  %s3012_s24 = smov 4  }
  0x16   :  { %56 = dma.hbm_to_vmem [thread:$0]  %s2999_s4, 512, %s51_s30, [#allocation6], %s3010_s23, %s3010_s23, %s3012_s24  }
  0x17   :  { %s2552_s27 = smov [#allocation8]   ;;  %s2315_s16 = scalar_lea.hbm %s3001_s6, 1024 }
  0x18   :  { %s74_s28 = sshll.u32 %s2552_s27, 4  ;;  %p2316_p8 = scmp.ne.s32.totalorder %s3001_s6, %s2315_s16  ;;  %s75_s28 = int_to_ptr.vmem [resolvable:$true] %s74_s28 }
  0x19   :  { %p2319_p9 = scmp.lt.u32.totalorder %s2315_s16, %s3001_s6 }
  0x1b   :  { %p2321_p10 = pnand %p2319_p9, %p2316_p8 }
  0x1d   :  { %2324 = shalt.err (!%p2321_p10)
}
  0x1e   :  { %s2325_s21 = scalar_lea.vmem %s75_s28, 1024  ;;  %p2330_p12 = scmp.lt.s32.totalorder %s75_s28, %s75_s28 }
  0x1f   :  { %p2326_p11 = scmp.ne.s32.totalorder %s75_s28, %s2325_s21  ;;  %p2331_p13 = scmp.lt.s32.totalorder %s2325_s21, %s2325_s21 }
  0x21   :  { %p2332_p0 = por %p2331_p13, %p2330_p12 }
  0x23   :  { %p2333_p1 = pnand %p2332_p0, %p2326_p11 }
  0x25   :  { %2336 = shalt.err (!%p2333_p1)
}
  0x26   :  { %s2553_s4 = smov 128   ;;  %s2554_s30 = smov 8  }
  0x27   :  { %80 = dma.hbm_to_vmem [thread:$0]  %s3001_s6, 1024, %s75_s28, [#allocation9], %s2553_s4, %s2553_s4, %s2554_s30  }
  0x28   :  { %s2555_s26 = smov [#allocation11]   ;;  %s2337_s16 = scalar_lea.hbm %s3004_s9, 4608 }
  0x29   :  { %s100_s27 = sshll.u32 %s2555_s26, 4  ;;  %p2338_p2 = scmp.ne.s32.totalorder %s3004_s9, %s2337_s16  ;;  %s101_s27 = int_to_ptr.vmem [resolvable:$true] %s100_s27 }
  0x2a   :  { %p2341_p3 = scmp.lt.u32.totalorder %s2337_s16, %s3004_s9 }
  0x2c   :  { %p2343_p4 = pnand %p2341_p3, %p2338_p2 }
  0x2e   :  { %2346 = shalt.err (!%p2343_p4)
}
  0x2f   :  { %s2347_s21 = scalar_lea.vmem %s101_s27, 4608  ;;  %p2352_p6 = scmp.lt.s32.totalorder %s101_s27, %s101_s27 }
  0x30   :  { %p2348_p5 = scmp.ne.s32.totalorder %s101_s27, %s2347_s21  ;;  %p2353_p7 = scmp.lt.s32.totalorder %s2347_s21, %s2347_s21 }
  0x32   :  { %p2354_p8 = por %p2353_p7, %p2352_p6 }
  0x34   :  { %p2355_p9 = pnand %p2354_p8, %p2348_p5 }
  0x36   :  { %2358 = shalt.err (!%p2355_p9)
}
  0x37   :  { %s2556_s6 = smov 192   ;;  %s2557_s28 = smov 12  }
  0x38   :  { %106 = dma.hbm_to_vmem [thread:$0]  %s3004_s9, 4608, %s101_s27, [#allocation12], %s2556_s6, %s2556_s6, %s2557_s28  }
  0x39   :  { %s2558_s26 = smov [#allocation14]   ;;  %s2559_s15 = smov [#allocation2]  }
  0x3a   :  { %s124_s29 = sshll.u32 %s2558_s26, 4  ;;  %s38_s16 = sshll.u32 %s2559_s15, 4  ;;  %s125_s29 = int_to_ptr.vmem [resolvable:$true] %s124_s29  ;;  %s39_s16 = int_to_ptr.vmem [resolvable:$true] %s38_s16 }
  0x3b   :  { %s2359_s19 = scalar_lea.hbm %s3006_s11, 3072 }
  0x3c   :  { %p2360_p10 = scmp.ne.s32.totalorder %s3006_s11, %s2359_s19  ;;  %p2363_p11 = scmp.lt.u32.totalorder %s2359_s19, %s3006_s11 }
  0x3e   :  { %p2365_p12 = pnand %p2363_p11, %p2360_p10 }
  0x40   :  { %2368 = shalt.err (!%p2365_p12)
}
  0x41   :  { %s2369_s9 = scalar_lea.vmem %s125_s29, 3072  ;;  %p2374_p0 = scmp.lt.s32.totalorder %s125_s29, %s125_s29 }
  0x42   :  { %p2370_p13 = scmp.ne.s32.totalorder %s125_s29, %s2369_s9  ;;  %p2375_p1 = scmp.lt.s32.totalorder %s2369_s9, %s2369_s9 }
  0x44   :  { %p2376_p2 = por %p2375_p1, %p2374_p0 }
  0x46   :  { %p2377_p3 = pnand %p2376_p2, %p2370_p13 }
  0x48   :  { %2380 = shalt.err (!%p2377_p3)
}
  0x49   :  { %130 = dma.hbm_to_vmem [thread:$0]  %s3006_s11, 3072, %s125_s29, [#allocation15], %s2553_s4, %s2553_s4, %s2554_s30  }
  0x4a   :  { %s2381_s24 = scalar_lea.hbm %s2998_s3, 768 }
  0x4b   :  { %p2382_p4 = scmp.ne.s32.totalorder %s2998_s3, %s2381_s24  ;;  %p2385_p5 = scmp.lt.u32.totalorder %s2381_s24, %s2998_s3 }
  0x4d   :  { %p2387_p6 = pnand %p2385_p5, %p2382_p4 }
  0x4f   :  { %2390 = shalt.err (!%p2387_p6)
}
  0x50   :  { %s2391_s19 = scalar_lea.vmem %s39_s16, 768  ;;  %p2396_p8 = scmp.lt.s32.totalorder %s39_s16, %s39_s16 }
  0x51   :  { %p2392_p7 = scmp.ne.s32.totalorder %s39_s16, %s2391_s19  ;;  %p2397_p9 = scmp.lt.s32.totalorder %s2391_s19, %s2391_s19 }
  0x53   :  { %p2398_p10 = por %p2397_p9, %p2396_p8 }
  0x55   :  { %p2399_p11 = pnand %p2398_p10, %p2392_p7 }
  0x57   :  { %2402 = shalt.err (!%p2399_p11)
}
  0x58   :  { %s2560_s11 = smov 384   ;;  %s2561_s29 = smov 24  }
  0x59   :  { %44 = dma.hbm_to_vmem [thread:$0]  %s2998_s3, 768, %s39_s16, [#allocation3], %s2560_s11, %s2560_s11, %s2561_s29  }
  0x5a   :  { %s2562_s9 = smov [#allocation7]   ;;  %s2563_s22 = smov [#allocation10]  }
  0x5b   :  { %s62_s27 = sshll.u32 %s2562_s9, 4  ;;  %s88_s25 = sshll.u32 %s2563_s22, 4  ;;  %s63_s27 = int_to_ptr.vmem [resolvable:$true] %s62_s27  ;;  %s89_s25 = int_to_ptr.vmem [resolvable:$true] %s88_s25 }
  0x5c   :  { %s2403_s26 = scalar_lea.hbm %s3000_s5, 512 }
  0x5d   :  { %p2404_p12 = scmp.ne.s32.totalorder %s3000_s5, %s2403_s26  ;;  %p2407_p13 = scmp.lt.u32.totalorder %s2403_s26, %s3000_s5 }
  0x5f   :  { %p2409_p0 = pnand %p2407_p13, %p2404_p12 }
  0x61   :  { %2412 = shalt.err (!%p2409_p0)
}
  0x62   :  { %s2413_s3 = scalar_lea.vmem %s63_s27, 512  ;;  %p2418_p2 = scmp.lt.s32.totalorder %s63_s27, %s63_s27 }
  0x63   :  { %p2414_p1 = scmp.ne.s32.totalorder %s63_s27, %s2413_s3  ;;  %p2419_p3 = scmp.lt.s32.totalorder %s2413_s3, %s2413_s3 }
  0x65   :  { %p2420_p4 = por %p2419_p3, %p2418_p2 }
  0x67   :  { %p2421_p5 = pnand %p2420_p4, %p2414_p1 }
  0x69   :  { %2424 = shalt.err (!%p2421_p5)
}
  0x6a   :  { %s3014_s16 = smov 4   ;;  %s3015_s11 = smov 64  }
  0x6b   :  { %68 = dma.hbm_to_vmem [thread:$0]  %s3000_s5, 512, %s63_s27, [#allocation6], %s3015_s11, %s3015_s11, %s3014_s16  }
  0x6c   :  { %s2425_s22 = scalar_lea.hbm %s3003_s8, 512 }
  0x6d   :  { %p2426_p6 = scmp.ne.s32.totalorder %s3003_s8, %s2425_s22  ;;  %p2429_p7 = scmp.lt.u32.totalorder %s2425_s22, %s3003_s8 }
  0x6f   :  { %p2431_p8 = pnand %p2429_p7, %p2426_p6 }
  0x71   :  { %2434 = shalt.err (!%p2431_p8)
}
  0x72   :  { %s2435_s17 = scalar_lea.vmem %s89_s25, 512  ;;  %p2440_p10 = scmp.lt.s32.totalorder %s89_s25, %s89_s25 }
  0x73   :  { %p2436_p9 = scmp.ne.s32.totalorder %s89_s25, %s2435_s17  ;;  %p2441_p11 = scmp.lt.s32.totalorder %s2435_s17, %s2435_s17 }
  0x75   :  { %p2442_p12 = por %p2441_p11, %p2440_p10 }
  0x77   :  { %p2443_p13 = pnand %p2442_p12, %p2436_p9 }
  0x79   :  { %2446 = shalt.err (!%p2443_p13)
}
  0x7a   :  { %94 = dma.hbm_to_vmem [thread:$0]  %s3003_s8, 512, %s89_s25, [#allocation9], %s3015_s11, %s3015_s11, %s3014_s16  }
  0x7b   :  { %s2564_s18 = smov [#allocation13]   ;;  %s2565_s3 = smov [#allocation16]  }
  0x7c   :  { %s112_s19 = sshll.u32 %s2564_s18, 4  ;;  %s136_s29 = sshll.u32 %s2565_s3, 4  ;;  %s113_s19 = int_to_ptr.vmem [resolvable:$true] %s112_s19  ;;  %s137_s29 = int_to_ptr.vmem [resolvable:$true] %s136_s29 }
  0x7d   :  { %s2447_s9 = scalar_lea.hbm %s3005_s10, 3072 }
  0x7e   :  { %p2448_p0 = scmp.ne.s32.totalorder %s3005_s10, %s2447_s9  ;;  %p2451_p1 = scmp.lt.u32.totalorder %s2447_s9, %s3005_s10 }
  0x80   :  { %p2453_p2 = pnand %p2451_p1, %p2448_p0 }
  0x82   :  { %2456 = shalt.err (!%p2453_p2)
}
  0x83   :  { %s2457_s8 = scalar_lea.vmem %s113_s19, 3072  ;;  %p2462_p4 = scmp.lt.s32.totalorder %s113_s19, %s113_s19 }
  0x84   :  { %p2458_p3 = scmp.ne.s32.totalorder %s113_s19, %s2457_s8  ;;  %p2463_p5 = scmp.lt.s32.totalorder %s2457_s8, %s2457_s8 }
  0x86   :  { %p2464_p6 = por %p2463_p5, %p2462_p4 }
  0x88   :  { %p2465_p7 = pnand %p2464_p6, %p2458_p3 }
  0x8a   :  { %2468 = shalt.err (!%p2465_p7)
}
  0x8b   :  { %118 = dma.hbm_to_vmem [thread:$0]  %s3005_s10, 3072, %s113_s19, [#allocation12], %s2553_s4, %s2553_s4, %s2554_s30  }
  0x8c   :  { %s2469_s5 = scalar_lea.hbm %s3007_s12, 3072 }
  0x8d   :  { %p2470_p8 = scmp.ne.s32.totalorder %s3007_s12, %s2469_s5  ;;  %p2473_p9 = scmp.lt.u32.totalorder %s2469_s5, %s3007_s12 }
  0x8f   :  { %p2475_p10 = pnand %p2473_p9, %p2470_p8 }
  0x91   :  { %2478 = shalt.err (!%p2475_p10)
}
  0x92   :  { %s2479_s21 = scalar_lea.vmem %s137_s29, 3072  ;;  %p2484_p12 = scmp.lt.s32.totalorder %s137_s29, %s137_s29 }
  0x93   :  { %p2480_p11 = scmp.ne.s32.totalorder %s137_s29, %s2479_s21  ;;  %p2485_p13 = scmp.lt.s32.totalorder %s2479_s21, %s2479_s21 }
  0x95   :  { %p2486_p0 = por %p2485_p13, %p2484_p12 }
  0x97   :  { %p2487_p1 = pnand %p2486_p0, %p2480_p11 }
  0x99   :  { %2490 = shalt.err (!%p2487_p1)
}
  0x9a   :  { %142 = dma.hbm_to_vmem [thread:$0]  %s3007_s12, 3072, %s137_s29, [#allocation15], %s2556_s6, %s2556_s6, %s2557_s28  }
  0x9b   :  { %2535 = dma.done.wait [#allocation3], 768  }
  0x9c   :  { %2536 = vsyncadd [#allocation3], 4294966528 }
  0x9d   :  { %2537 = dma.done.wait [#allocation6], 1024  }
  0x9e   :  { %2538 = vsyncadd [#allocation6], 4294966272 }
  0x9f   :  { %2539 = dma.done.wait [#allocation9], 1536  }
  0xa0   :  { %2540 = vsyncadd [#allocation9], 4294965760 }
  0xa1   :  { %2541 = dma.done.wait [#allocation12], 7680  }
  0xa2   :  { %2542 = vsyncadd [#allocation12], 4294959616 }
  0xa3   :  { %2543 = dma.done.wait [#allocation15], 6144  }
  0xa4   :  { %2544 = vsyncadd [#allocation15], 4294961152  ;;  %v2566_v0 = vmov 0.0   ;;  %vm2567_vm0 = vmmov 0   ;;  %v2081_v1 = vld [vmem:[#allocation5] sm:$0xff]   ;;  %v2082_v2 = vld [vmem:[#allocation5 + $0x8] sm:$0xff]   ;;  %v187_v15 = vlaneseq }
  0xa5   :  { %2003 = vmatprep.subr.bf16.mxu0 %v2566_v0  ;;  %2011 = vmatprep.mubr.msk.bf16.mxu0 %vm2567_vm0, %v2566_v0  ;;  %v2085_v3 = vld [vmem:[#allocation7] sm:$0xff]   ;;  %v2083_v4 = vld [vmem:[#allocation5 + $0x10] sm:$0xff]   ;;  %v2086_v5 = vld [vmem:[#allocation7 + $0x8] sm:$0xff]   ;;  %vm215_vm1 = vcmask 523264   ;;  %v2568_v32 = vmov 0   ;;  %s2569_s9 = smov [#allocation17]  }
  0xa6   :  { %2015 = vmatprep.subr.bf16.mxu1 %v2566_v0  ;;  %2023 = vmatprep.mubr.msk.bf16.mxu1 %vm2567_vm0, %v2566_v0  ;;  %v2084_v6 = vld [vmem:[#allocation5 + $0x18] sm:$0xff]   ;;  %v177_v7 = vld [vmem:[%s2995_s0] sm:$0xff]  ;;  %v2089_v11 = vld [vmem:[#allocation8] ss:$8 sps:$4 sm:$0xff]   ;;  %v2794_v16 = vshrl.u32 %v187_v15, 7  ;;  %s1788_s22 = sshll.u32 %s2569_s9, 4  ;;  %s1789_s22 = int_to_ptr.vmem [resolvable:$true] %s1788_s22 }
  0xa7   :  { %2004 = vmatpush3.bf16.msra.mxu0 %v2081_v1  ;;  %2016 = vmatpush3.bf16.msra.mxu1 %v2085_v3  ;;  %v178_v8 = vpack.c.bf16 %v177_v7, %v177_v7  ;;  %v2087_v9 = vld [vmem:[#allocation7 + $0x10] sm:$0xff]   ;;  %v2088_v10 = vld [vmem:[#allocation7 + $0x18] sm:$0xff]   ;;  %v2091_v12 = vld [vmem:[#allocation8 + $0x4] ss:$8 sps:$4 sm:$0xff]   ;;  %s2491_s23 = scalar_lea.vmem %s1789_s22, 256  ;;  %p2496_p3 = scmp.lt.s32.totalorder %s1789_s22, %s1789_s22 }
  0xa8   :  { %2005 = vmatprep.subr.bf16.mxu0 %v2566_v0  ;;  %2017 = vmatprep.subr.bf16.mxu1 %v2566_v0  ;;  %v2094_v13 = vld [vmem:[#allocation8 + $0x14] ss:$8 sps:$4 sm:$0xff]   ;;  %v2092_v14 = vld [vmem:[#allocation8 + $0x10] ss:$8 sps:$4 sm:$0xff]   ;;  %v2797_v17 = vsub.s32 0, %v2794_v16  ;;  %v273_v53 = vsub.s32 1, %v2794_v16  ;;  %p2492_p2 = scmp.ne.s32.totalorder %s1789_s22, %s2491_s23  ;;  %p2497_p4 = scmp.lt.s32.totalorder %s2491_s23, %s2491_s23 }
  0xa9   :  { %v2799_v18 = vld [vmem:[#allocation2] sm:$0xff]  ;;  %v2097_v28 = vld [vmem:[#allocation8 + $0x24] ss:$8 sps:$4 sm:$0xff]   ;;  %v2095_v29 = vld [vmem:[#allocation8 + $0x20] ss:$8 sps:$4 sm:$0xff]  }
  0xaa   :  { %v190_v19 = vrot.slane %v2799_v18, %v2797_v17  ;;  %v2100_v30 = vld [vmem:[#allocation8 + $0x34] ss:$8 sps:$4 sm:$0xff]   ;;  %v2098_v31 = vld [vmem:[#allocation8 + $0x30] ss:$8 sps:$4 sm:$0xff]   ;;  %v2106_v35 = vld [vmem:[%s3002_s7 + $0x14] ss:$8 sps:$4 sm:$0xff]   ;;  %v274_v54 = vrot.slane %v2799_v18, %v273_v53  ;;  %p2498_p5 = por %p2497_p4, %p2496_p3 }
  0xab   :  { %2006 = vmatpush3.bf16.msra.mxu0 %v2082_v2  ;;  %2018 = vmatpush3.bf16.msra.mxu1 %v2086_v5  ;;  %v2101_v33 = vld [vmem:[%s3002_s7] ss:$8 sps:$4 sm:$0xff]   ;;  %v2103_v34 = vld [vmem:[%s3002_s7 + $0x4] ss:$8 sps:$4 sm:$0xff]   ;;  %v2104_v36 = vld [vmem:[%s3002_s7 + $0x10] ss:$8 sps:$4 sm:$0xff]  }
  0xac   :  { %2007 = vmatprep.subr.bf16.mxu0 %v2566_v0  ;;  %2019 = vmatprep.subr.bf16.mxu1 %v2566_v0  ;;  %v2109_v37 = vld [vmem:[%s3002_s7 + $0x24] ss:$8 sps:$4 sm:$0xff]   ;;  %v2107_v38 = vld [vmem:[%s3002_s7 + $0x20] ss:$8 sps:$4 sm:$0xff]   ;;  %v2112_v39 = vld [vmem:[%s3002_s7 + $0x34] ss:$8 sps:$4 sm:$0xff]   ;;  %p2499_p6 = pnand %p2498_p5, %p2492_p2 }
  0xad   :  { %v2110_v40 = vld [vmem:[%s3002_s7 + $0x30] ss:$8 sps:$4 sm:$0xff]   ;;  %v2115_v41 = vld [vmem:[%s3002_s7 + $0x44] ss:$8 sps:$4 sm:$0xff]   ;;  %v2113_v42 = vld [vmem:[%s3002_s7 + $0x40] ss:$8 sps:$4 sm:$0xff]  }
  0xae   :  { %v2118_v43 = vld [vmem:[%s3002_s7 + $0x54] ss:$8 sps:$4 sm:$0xff]   ;;  %v2116_v44 = vld [vmem:[%s3002_s7 + $0x50] ss:$8 sps:$4 sm:$0xff]   ;;  %v2121_v45 = vld [vmem:[%s3002_s7 + $0x64] ss:$8 sps:$4 sm:$0xff]  }
  0xaf   :  { %2008 = vmatpush3.bf16.msra.mxu0 %v2083_v4  ;;  %2020 = vmatpush3.bf16.msra.mxu1 %v2087_v9  ;;  %v2119_v46 = vld [vmem:[%s3002_s7 + $0x60] ss:$8 sps:$4 sm:$0xff]   ;;  %v2124_v47 = vld [vmem:[%s3002_s7 + $0x74] ss:$8 sps:$4 sm:$0xff]   ;;  %v2122_v48 = vld [vmem:[%s3002_s7 + $0x70] ss:$8 sps:$4 sm:$0xff]  }
  0xb0   :  { %2009 = vmatprep.subr.bf16.mxu0 %v2566_v0  ;;  %2021 = vmatprep.subr.bf16.mxu1 %v2566_v0  ;;  %v2127_v49 = vld [vmem:[%s3002_s7 + $0x84] ss:$8 sps:$4 sm:$0xff]   ;;  %v2125_v50 = vld [vmem:[%s3002_s7 + $0x80] ss:$8 sps:$4 sm:$0xff]   ;;  %v2130_v51 = vld [vmem:[%s3002_s7 + $0x94] ss:$8 sps:$4 sm:$0xff]  }
  0xb1   :  { %v2128_v52 = vld [vmem:[%s3002_s7 + $0x90] ss:$8 sps:$4 sm:$0xff]   ;;  %v2133_v63 = vld [vmem:[%s3002_s7 + $0xa4] ss:$8 sps:$4 sm:$0xff]   ;;  %v2131_v1 = vld [vmem:[%s3002_s7 + $0xa0] ss:$8 sps:$4 sm:$0xff]  }
  0xb2   :  { %v2136_v2 = vld [vmem:[%s3002_s7 + $0xb4] ss:$8 sps:$4 sm:$0xff]   ;;  %v2134_v3 = vld [vmem:[%s3002_s7 + $0xb0] ss:$8 sps:$4 sm:$0xff]   ;;  %v2140_v7 = vld [vmem:[#allocation10 + $0x18] sm:$0xff]  }
  0xb3   :  { %2010 = vmatpush3.bf16.msra.mxu0 %v2084_v6  ;;  %2022 = vmatpush3.bf16.msra.mxu1 %v2088_v10  ;;  %v2137_v4 = vld [vmem:[#allocation10] sm:$0xff]   ;;  %v2138_v5 = vld [vmem:[#allocation10 + $0x8] sm:$0xff]   ;;  %v2139_v6 = vld [vmem:[#allocation10 + $0x10] sm:$0xff]  }
  0xb4   :  { %405 = vmatprep.subr.bf16.mxu0 %v2091_v12  ;;  %617 = vmatprep.subr.bf16.mxu1 %v2103_v34  ;;  %v2888_v9 = vld [vmem:[#allocation2 + $0x8] sm:$0xff]  ;;  %v2890_v10 = vld [vmem:[#allocation2 + $0x18] sm:$0xff] }
  0xb5   :  { %v451_v15 = vrot.slane %v2890_v10, %v273_v53  ;;  %v2148_v34 = vld [vmem:[#allocation11 + $0x20] ss:$12 sps:$4 sm:$0xff]  }
  0xb6   :  { %2012 = vmatmul.mubr.msk.bf16.vlgmr.msra.gmra.mrb[0].mxu0 %vm215_vm1, %v178_v8  ;;  %v356_v8 = vsub.s32 2, %v2794_v16 }
  0xb7   :  { %406 = vmatpush1.bf16.msra.mxu0 %v2089_v11  ;;  %437 = vmatprep.mubr.bf16.mxu0 %v2568_v32  ;;  %v2143_v11 = vld [vmem:[#allocation11 + $0x4] ss:$12 sps:$4 sm:$0xff]  }
  0xb8   :  { %407 = vmatprep.subr.bf16.mxu0 %v2094_v13  ;;  %v357_v12 = vrot.slane %v2799_v18, %v356_v8  ;;  %v2893_v13 = vld [vmem:[#allocation2 + $0x20] sm:$0xff] }
  0xbb   :  { %408 = vmatpush1.bf16.msra.mxu0 %v2092_v14  ;;  %v361_v14 = vrot.slane %v2888_v9, %v356_v8 }
  0xbc   :  { %409 = vmatprep.subr.bf16.mxu0 %v2097_v28 }
  0xbf   :  { %410 = vmatpush1.bf16.msra.mxu0 %v2095_v29 }
  0xc0   :  { %411 = vmatprep.subr.bf16.mxu0 %v2100_v30 }
  0xc3   :  { %412 = vmatpush1.bf16.msra.mxu0 %v2098_v31  ;;  %v2144_v31 = vld [vmem:[#allocation11 + $0x8] ss:$12 sps:$4 sm:$0xff]  }
  0xc4   :  { %2027 = vmatprep.subr.bf16.mxu0 %v2566_v0 }
 0x189   :  { %v253_v20 = vpop.f32.mrb[0].mxu0 }
 0x18a   :  { %v254_v21 = vadd.f32 %v253_v20, %v190_v19  ;;  %v2013_v22 = vpop.f32.mrb[1].mxu0  ;;  %v455_v20 = vrot.slane %v2893_v13, %v273_v53  ;;  %v2159_v53 = vld [vmem:[#allocation11 + $0x64] ss:$12 sps:$4 sm:$0xff]  }
 0x18b   :  { %v256_v23 = vpop.f32.mrb[2].mxu0 }
 0x18c   :  { %vm259_vm2 = vcmp.ge.f32.partialorder %v254_v21, 0.0  ;;  %v260_v24 = vmul.f32 0.01, %v254_v21  ;;  %v2014_v25 = vpop.f32.mrb[3].mxu0 }
 0x18e   :  { %v261_v26 = vsel %vm259_vm2, %v254_v21, %v260_v24 }
 0x18f   :  { %v262_v27 = vpack.c.bf16 %v261_v26, %v261_v26 }
 0x191   :  { %2024 = vmatmul.mubr.msk.bf16.vlgmr.msra.gmra.mrb[0].mxu1 %vm215_vm1, %v262_v27 }
 0x192   :  { %618 = vmatpush1.bf16.msra.mxu1 %v2101_v33 }
 0x193   :  { %619 = vmatprep.subr.bf16.mxu1 %v2106_v35  ;;  %v2152_v35 = vld [vmem:[#allocation11 + $0x38] ss:$12 sps:$4 sm:$0xff]  }
 0x196   :  { %620 = vmatpush1.bf16.msra.mxu1 %v2104_v36  ;;  %v2156_v36 = vld [vmem:[#allocation11 + $0x50] ss:$12 sps:$4 sm:$0xff]  }
 0x197   :  { %621 = vmatprep.subr.bf16.mxu1 %v2109_v37  ;;  %v2160_v37 = vld [vmem:[#allocation11 + $0x68] ss:$12 sps:$4 sm:$0xff]  }
 0x19a   :  { %622 = vmatpush1.bf16.msra.mxu1 %v2107_v38  ;;  %v2164_v38 = vld [vmem:[#allocation11 + $0x80] ss:$12 sps:$4 sm:$0xff]  }
 0x19b   :  { %623 = vmatprep.subr.bf16.mxu1 %v2112_v39  ;;  %v2168_v39 = vld [vmem:[#allocation11 + $0x98] ss:$12 sps:$4 sm:$0xff]  }
 0x19e   :  { %624 = vmatpush1.bf16.msra.mxu1 %v2110_v40  ;;  %v2172_v40 = vld [vmem:[#allocation11 + $0xb0] ss:$12 sps:$4 sm:$0xff]  }
 0x19f   :  { %625 = vmatprep.subr.bf16.mxu1 %v2115_v41  ;;  %v2176_v41 = vld [vmem:[#allocation11 + $0xc8] ss:$12 sps:$4 sm:$0xff]  }
 0x1a2   :  { %626 = vmatpush1.bf16.msra.mxu1 %v2113_v42  ;;  %v2180_v42 = vld [vmem:[#allocation11 + $0xe0] ss:$12 sps:$4 sm:$0xff]  }
 0x1a3   :  { %627 = vmatprep.subr.bf16.mxu1 %v2118_v43  ;;  %v2184_v43 = vld [vmem:[#allocation11 + $0xf8] ss:$12 sps:$4 sm:$0xff]  }
 0x1a6   :  { %628 = vmatpush1.bf16.msra.mxu1 %v2116_v44  ;;  %v2188_v44 = vld [vmem:[#allocation11 + $0x110] ss:$12 sps:$4 sm:$0xff]  }
 0x1a7   :  { %629 = vmatprep.subr.bf16.mxu1 %v2121_v45  ;;  %v2141_v45 = vld [vmem:[#allocation11] ss:$12 sps:$4 sm:$0xff]  }
 0x1aa   :  { %630 = vmatpush1.bf16.msra.mxu1 %v2119_v46  ;;  %v2147_v46 = vld [vmem:[#allocation11 + $0x1c] ss:$12 sps:$4 sm:$0xff]  }
 0x1ab   :  { %631 = vmatprep.subr.bf16.mxu1 %v2124_v47 }
 0x1ae   :  { %632 = vmatpush1.bf16.msra.mxu1 %v2122_v48  ;;  %v2145_v48 = vld [vmem:[#allocation11 + $0x18] ss:$12 sps:$4 sm:$0xff]  }
 0x1af   :  { %633 = vmatprep.subr.bf16.mxu1 %v2127_v49  ;;  %v2151_v49 = vld [vmem:[#allocation11 + $0x34] ss:$12 sps:$4 sm:$0xff]  }
 0x1b2   :  { %634 = vmatpush1.bf16.msra.mxu1 %v2125_v50  ;;  %v2149_v50 = vld [vmem:[#allocation11 + $0x30] ss:$12 sps:$4 sm:$0xff]  }
 0x1b3   :  { %635 = vmatprep.subr.bf16.mxu1 %v2130_v51  ;;  %v2155_v51 = vld [vmem:[#allocation11 + $0x4c] ss:$12 sps:$4 sm:$0xff]  }
 0x1b6   :  { %636 = vmatpush1.bf16.msra.mxu1 %v2128_v52  ;;  %v2153_v52 = vld [vmem:[#allocation11 + $0x48] ss:$12 sps:$4 sm:$0xff]  }
 0x1b7   :  { %637 = vmatprep.subr.bf16.mxu1 %v2133_v63  ;;  %v2179_v63 = vld [vmem:[#allocation11 + $0xdc] ss:$12 sps:$4 sm:$0xff]  }
 0x1ba   :  { %638 = vmatpush1.bf16.msra.mxu1 %v2131_v1  ;;  %v2177_v1 = vld [vmem:[#allocation11 + $0xd8] ss:$12 sps:$4 sm:$0xff]  }
 0x1bb   :  { %639 = vmatprep.subr.bf16.mxu1 %v2136_v2  ;;  %v2183_v2 = vld [vmem:[#allocation11 + $0xf4] ss:$12 sps:$4 sm:$0xff]  }
 0x1be   :  { %640 = vmatpush1.bf16.msra.mxu1 %v2134_v3  ;;  %v2181_v3 = vld [vmem:[#allocation11 + $0xf0] ss:$12 sps:$4 sm:$0xff]  }
 0x1bf   :  { %1045 = vmatprep.subr.bf16.mxu1 %v2568_v32 }
 0x264   :  { %v336_v55 = vpop.f32.mrb[0].mxu1 }
 0x265   :  { %v337_v56 = vadd.f32 %v336_v55, %v274_v54  ;;  %v2025_v57 = vpop.f32.mrb[1].mxu1  ;;  %v2157_v54 = vld [vmem:[#allocation11 + $0x60] ss:$12 sps:$4 sm:$0xff]   ;;  %v2163_v55 = vld [vmem:[#allocation11 + $0x7c] ss:$12 sps:$4 sm:$0xff]  }
 0x266   :  { %v339_v58 = vpop.f32.mrb[2].mxu1  ;;  %v2167_v57 = vld [vmem:[#allocation11 + $0x94] ss:$12 sps:$4 sm:$0xff]  }
 0x267   :  { %vm342_vm3 = vcmp.ge.f32.partialorder %v337_v56, 0.0  ;;  %v343_v59 = vmul.f32 0.01, %v337_v56  ;;  %v2026_v60 = vpop.f32.mrb[3].mxu1  ;;  %v2165_v58 = vld [vmem:[#allocation11 + $0x90] ss:$12 sps:$4 sm:$0xff]  }
 0x268   :  { %v2169_v60 = vld [vmem:[#allocation11 + $0xa8] ss:$12 sps:$4 sm:$0xff]  }
 0x269   :  { %v344_v61 = vsel %vm342_vm3, %v337_v56, %v343_v59  ;;  %v2161_v56 = vld [vmem:[#allocation11 + $0x78] ss:$12 sps:$4 sm:$0xff]  }
 0x26a   :  { %v345_v62 = vpack.c.bf16 %v344_v61, %v344_v61  ;;  %v2171_v59 = vld [vmem:[#allocation11 + $0xac] ss:$12 sps:$4 sm:$0xff]   ;;  %v2175_v61 = vld [vmem:[#allocation11 + $0xc4] ss:$12 sps:$4 sm:$0xff]  }
 0x26c   :  { %1833 = vmatmul.mubr.msk.bf16.vlgmr.msra.gmra.mrb[4].mxu0 %vm215_vm1, %v345_v62  ;;  %v2173_v62 = vld [vmem:[#allocation11 + $0xc0] ss:$12 sps:$4 sm:$0xff]  }
 0x26d   :  { %2035 = vmatprep.mubr.msk.bf16.mxu0 %vm2567_vm0, %v2566_v0  ;;  %2028 = vmatpush3.bf16.msra.mxu0 %v2137_v4  ;;  %v2187_v4 = vld [vmem:[#allocation11 + $0x10c] ss:$12 sps:$4 sm:$0xff]  }
 0x26e   :  { %2029 = vmatprep.subr.bf16.mxu0 %v2566_v0 }
 0x271   :  { %2030 = vmatpush3.bf16.msra.mxu0 %v2138_v5  ;;  %v2185_v5 = vld [vmem:[#allocation11 + $0x108] ss:$12 sps:$4 sm:$0xff]  }
 0x272   :  { %2031 = vmatprep.subr.bf16.mxu0 %v2566_v0 }
 0x275   :  { %2032 = vmatpush3.bf16.msra.mxu0 %v2139_v6  ;;  %v2191_v6 = vld [vmem:[#allocation13 + $0x4] ss:$8 sps:$4 sm:$0xff]  }
 0x276   :  { %2033 = vmatprep.subr.bf16.mxu0 %v2566_v0 }
 0x279   :  { %2034 = vmatpush3.bf16.msra.mxu0 %v2140_v7  ;;  %v488_v7 = vsub.s32 3, %v2794_v16 }
 0x27a   :  { %1004 = vmatprep.subr.bf16.mxu0 %v2143_v11 }
 0x27b   :  { %v489_v8 = vrot.slane %v2799_v18, %v488_v7  ;;  %v493_v11 = vrot.slane %v2888_v9, %v488_v7  ;;  %v2267_v7 = vld [vmem:[#allocation14 + $0x60] ss:$8 sps:$4 sm:$0xff]  }
 0x33f   :  { %v439_v19 = vpop.f32.mrb[4].mxu0 }
 0x340   :  { %v440_v21 = vadd.f32 %v439_v19, %v357_v12  ;;  %v441_v22 = vpop.f32.mrb[5].mxu0 }
 0x341   :  { %v442_v23 = vadd.f32 %v441_v22, %v361_v14  ;;  %v443_v24 = vpop.f32.mrb[6].mxu0 }
 0x342   :  { %vm446_vm4 = vcmp.ge.f32.partialorder %v440_v21, 0.0  ;;  %v456_v25 = vmul.f32 %v451_v15, %v440_v21  ;;  %v444_v26 = vpop.f32.mrb[7].mxu0 }
 0x343   :  { %v457_v27 = vmul.f32 %v455_v20, %v442_v23  ;;  %vm447_vm5 = vcmp.ge.f32.partialorder %v442_v23, 0.0 }
 0x344   :  { %v458_v28 = vsel %vm446_vm4, %v440_v21, %v456_v25 }
 0x345   :  { %v459_v29 = vsel %vm447_vm5, %v442_v23, %v457_v27  ;;  %v460_v33 = vpack.c.bf16 %v458_v28, %v458_v28  ;;  %v2189_v27 = vld [vmem:[#allocation13] ss:$8 sps:$4 sm:$0xff]  }
 0x346   :  { %v461_v30 = vpack.c.bf16 %v459_v29, %v459_v29  ;;  %v2194_v29 = vld [vmem:[#allocation13 + $0x14] ss:$8 sps:$4 sm:$0xff]  }
 0x348   :  { %677 = vrot.lane.b32.xlu0 %v461_v30, %s3015_s11  ;;  %1858 = vmatprep.mubr.msk.bf16.mxu1 %vm215_vm1, %v461_v30  ;;  %v2192_v30 = vld [vmem:[#allocation13 + $0x10] ss:$8 sps:$4 sm:$0xff]  }
 0x349   :  { %650 = vmatmul.mubr.bf16.vlgmr.msra.gmra.mrb[4].mxu1 %v460_v33  ;;  %v2195_v33 = vld [vmem:[#allocation13 + $0x20] ss:$8 sps:$4 sm:$0xff]  }
 0x34a   :  { %1046 = vmatpush1.bf16.msra.mxu1 %v2144_v31  ;;  %v2197_v31 = vld [vmem:[#allocation13 + $0x24] ss:$8 sps:$4 sm:$0xff]  }
 0x34b   :  { %1047 = vmatprep.subr.bf16.mxu1 %v2568_v32 }
 0x34e   :  { %1048 = vmatpush1.bf16.msra.mxu1 %v2148_v34  ;;  %v2200_v34 = vld [vmem:[#allocation13 + $0x34] ss:$8 sps:$4 sm:$0xff]  }
 0x34f   :  { %1049 = vmatprep.subr.bf16.mxu1 %v2568_v32 }
 0x352   :  { %1050 = vmatpush1.bf16.msra.mxu1 %v2152_v35  ;;  %v2198_v35 = vld [vmem:[#allocation13 + $0x30] ss:$8 sps:$4 sm:$0xff]  }
 0x353   :  { %1051 = vmatprep.subr.bf16.mxu1 %v2568_v32 }
 0x356   :  { %1052 = vmatpush1.bf16.msra.mxu1 %v2156_v36  ;;  %v2203_v36 = vld [vmem:[#allocation13 + $0x44] ss:$8 sps:$4 sm:$0xff]  }
 0x357   :  { %1053 = vmatprep.subr.bf16.mxu1 %v2568_v32 }
 0x35a   :  { %1054 = vmatpush1.bf16.msra.mxu1 %v2160_v37  ;;  %v2201_v37 = vld [vmem:[#allocation13 + $0x40] ss:$8 sps:$4 sm:$0xff]  }
 0x35b   :  { %1055 = vmatprep.subr.bf16.mxu1 %v2568_v32 }
 0x35e   :  { %1056 = vmatpush1.bf16.msra.mxu1 %v2164_v38  ;;  %v2206_v38 = vld [vmem:[#allocation13 + $0x54] ss:$8 sps:$4 sm:$0xff]  }
 0x35f   :  { %1057 = vmatprep.subr.bf16.mxu1 %v2568_v32 }
 0x362   :  { %1058 = vmatpush1.bf16.msra.mxu1 %v2168_v39  ;;  %v2204_v39 = vld [vmem:[#allocation13 + $0x50] ss:$8 sps:$4 sm:$0xff]  }
 0x363   :  { %1059 = vmatprep.subr.bf16.mxu1 %v2568_v32 }
 0x366   :  { %1060 = vmatpush1.bf16.msra.mxu1 %v2172_v40  ;;  %v2209_v40 = vld [vmem:[#allocation13 + $0x64] ss:$8 sps:$4 sm:$0xff]  }
 0x367   :  { %1061 = vmatprep.subr.bf16.mxu1 %v2568_v32 }
 0x36a   :  { %1062 = vmatpush1.bf16.msra.mxu1 %v2176_v41  ;;  %v2207_v41 = vld [vmem:[#allocation13 + $0x60] ss:$8 sps:$4 sm:$0xff]  }
 0x36b   :  { %1063 = vmatprep.subr.bf16.mxu1 %v2568_v32 }
 0x36e   :  { %1064 = vmatpush1.bf16.msra.mxu1 %v2180_v42  ;;  %v2212_v42 = vld [vmem:[#allocation13 + $0x74] ss:$8 sps:$4 sm:$0xff]  }
 0x36f   :  { %1065 = vmatprep.subr.bf16.mxu1 %v2568_v32 }
 0x372   :  { %1066 = vmatpush1.bf16.msra.mxu1 %v2184_v43  ;;  %v2210_v43 = vld [vmem:[#allocation13 + $0x70] ss:$8 sps:$4 sm:$0xff]  }
 0x373   :  { %1067 = vmatprep.subr.bf16.mxu1 %v2568_v32 }
 0x376   :  { %1068 = vmatpush1.bf16.msra.mxu1 %v2188_v44  ;;  %v2215_v44 = vld [vmem:[#allocation13 + $0x84] ss:$8 sps:$4 sm:$0xff]  }
 0x3ba   :  { %v678_v47 = vpop.permute.xlu0 %677 }
 0x3bb   :  { %2036 = vmatmul.mubr.msk.bf16.vlgmr.msra.gmra.mrb[8].mxu0 %vm215_vm1, %v678_v47  ;;  %v2216_v47 = vld [vmem:[#allocation13 + $0x90] ss:$8 sps:$4 sm:$0xff]  }
 0x3bc   :  { %1005 = vmatpush1.bf16.msra.mxu0 %v2141_v45  ;;  %v2213_v45 = vld [vmem:[#allocation13 + $0x80] ss:$8 sps:$4 sm:$0xff]  }
 0x3bd   :  { %1006 = vmatprep.subr.bf16.mxu0 %v2147_v46  ;;  %v2218_v46 = vld [vmem:[#allocation13 + $0x94] ss:$8 sps:$4 sm:$0xff]  }
 0x3c0   :  { %1007 = vmatpush1.bf16.msra.mxu0 %v2145_v48  ;;  %v2221_v48 = vld [vmem:[#allocation13 + $0xa4] ss:$8 sps:$4 sm:$0xff]  }
 0x3c1   :  { %1008 = vmatprep.subr.bf16.mxu0 %v2151_v49  ;;  %v2219_v49 = vld [vmem:[#allocation13 + $0xa0] ss:$8 sps:$4 sm:$0xff]  }
 0x3c4   :  { %1009 = vmatpush1.bf16.msra.mxu0 %v2149_v50  ;;  %v2224_v50 = vld [vmem:[#allocation13 + $0xb4] ss:$8 sps:$4 sm:$0xff]  }
 0x3c5   :  { %1010 = vmatprep.subr.bf16.mxu0 %v2155_v51  ;;  %v2222_v51 = vld [vmem:[#allocation13 + $0xb0] ss:$8 sps:$4 sm:$0xff]  }
 0x3c8   :  { %1011 = vmatpush1.bf16.msra.mxu0 %v2153_v52  ;;  %v2227_v52 = vld [vmem:[#allocation16 + $0x4] ss:$12 sps:$4 sm:$0xff]  }
 0x3c9   :  { %1012 = vmatprep.subr.bf16.mxu0 %v2159_v53 }
 0x3cc   :  { %1013 = vmatpush1.bf16.msra.mxu0 %v2157_v54 }
 0x3cd   :  { %1014 = vmatprep.subr.bf16.mxu0 %v2163_v55 }
 0x3d0   :  { %1015 = vmatpush1.bf16.msra.mxu0 %v2161_v56 }
 0x3d1   :  { %1016 = vmatprep.subr.bf16.mxu0 %v2167_v57  ;;  %v2249_v57 = vld [vmem:[#allocation14] ss:$8 sps:$4 sm:$0xff]  }
 0x3d4   :  { %1017 = vmatpush1.bf16.msra.mxu0 %v2165_v58  ;;  %v2251_v58 = vld [vmem:[#allocation14 + $0x4] ss:$8 sps:$4 sm:$0xff]  }
 0x3d5   :  { %1018 = vmatprep.subr.bf16.mxu0 %v2171_v59  ;;  %v2254_v59 = vld [vmem:[#allocation14 + $0x14] ss:$8 sps:$4 sm:$0xff]   ;;  %1457 = vmatprep.subr.bf16.mxu1 %v2251_v58  ;;  %v2239_v58 = vld [vmem:[#allocation16 + $0x64] ss:$12 sps:$4 sm:$0xff]  }
 0x3d8   :  { %1019 = vmatpush1.bf16.msra.mxu0 %v2169_v60  ;;  %v2252_v60 = vld [vmem:[#allocation14 + $0x10] ss:$8 sps:$4 sm:$0xff]  }
 0x3d9   :  { %1020 = vmatprep.subr.bf16.mxu0 %v2175_v61  ;;  %v2257_v61 = vld [vmem:[#allocation14 + $0x24] ss:$8 sps:$4 sm:$0xff]  }
 0x3dc   :  { %1021 = vmatpush1.bf16.msra.mxu0 %v2173_v62  ;;  %v2255_v62 = vld [vmem:[#allocation14 + $0x20] ss:$8 sps:$4 sm:$0xff]  }
 0x3dd   :  { %1022 = vmatprep.subr.bf16.mxu0 %v2179_v63  ;;  %v2260_v63 = vld [vmem:[#allocation14 + $0x34] ss:$8 sps:$4 sm:$0xff]  }
 0x3e0   :  { %1023 = vmatpush1.bf16.msra.mxu0 %v2177_v1  ;;  %v2258_v1 = vld [vmem:[#allocation14 + $0x30] ss:$8 sps:$4 sm:$0xff]  }
 0x3e1   :  { %1024 = vmatprep.subr.bf16.mxu0 %v2183_v2  ;;  %v2263_v2 = vld [vmem:[#allocation14 + $0x44] ss:$8 sps:$4 sm:$0xff]  }
 0x3e4   :  { %1025 = vmatpush1.bf16.msra.mxu0 %v2181_v3  ;;  %v2261_v3 = vld [vmem:[#allocation14 + $0x40] ss:$8 sps:$4 sm:$0xff]  }
 0x3e5   :  { %1026 = vmatprep.subr.bf16.mxu0 %v2187_v4  ;;  %v2266_v4 = vld [vmem:[#allocation14 + $0x54] ss:$8 sps:$4 sm:$0xff]  }
 0x3e8   :  { %1027 = vmatpush1.bf16.msra.mxu0 %v2185_v5  ;;  %v2264_v5 = vld [vmem:[#allocation14 + $0x50] ss:$8 sps:$4 sm:$0xff]  }
 0x3e9   :  { %1251 = vmatprep.subr.bf16.mxu0 %v2191_v6  ;;  %v2269_v6 = vld [vmem:[#allocation14 + $0x64] ss:$8 sps:$4 sm:$0xff]  }
 0x41c   :  { %v651_v12 = vpop.f32.mrb[4].mxu1 }
 0x41d   :  { %v652_v14 = vadd.f32 %v651_v12, %v489_v8  ;;  %v653_v15 = vpop.f32.mrb[5].mxu1  ;;  %v2272_v8 = vld [vmem:[#allocation14 + $0x74] ss:$8 sps:$4 sm:$0xff]   ;;  %v2275_v12 = vld [vmem:[#allocation14 + $0x84] ss:$8 sps:$4 sm:$0xff]  }
 0x41e   :  { %v654_v19 = vadd.f32 %v653_v15, %v493_v11  ;;  %v655_v20 = vpop.f32.mrb[6].mxu1  ;;  %v2270_v11 = vld [vmem:[#allocation14 + $0x70] ss:$8 sps:$4 sm:$0xff]   ;;  %v2278_v15 = vld [vmem:[#allocation14 + $0x94] ss:$8 sps:$4 sm:$0xff]  }
 0x41f   :  { %vm658_vm6 = vcmp.ge.f32.partialorder %v652_v14, 0.0  ;;  %v660_v21 = vmul.f32 0.01, %v652_v14  ;;  %v656_v22 = vpop.f32.mrb[7].mxu1  ;;  %v2281_v20 = vld [vmem:[#allocation14 + $0xa4] ss:$8 sps:$4 sm:$0xff]  }
 0x420   :  { %vm659_vm7 = vcmp.ge.f32.partialorder %v654_v19, 0.0  ;;  %v661_v23 = vmul.f32 0.01, %v654_v19  ;;  %v2284_v22 = vld [vmem:[#allocation14 + $0xb4] ss:$8 sps:$4 sm:$0xff]  }
 0x421   :  { %v662_v24 = vsel %vm658_vm6, %v652_v14, %v660_v21  ;;  %v2273_v14 = vld [vmem:[#allocation14 + $0x80] ss:$8 sps:$4 sm:$0xff]  }
 0x422   :  { %v663_v25 = vsel %vm659_vm7, %v654_v19, %v661_v23  ;;  %v747_v28 = vpack.c.bf16 %v662_v24, %v662_v24  ;;  %v2276_v19 = vld [vmem:[#allocation14 + $0x90] ss:$8 sps:$4 sm:$0xff]   ;;  %v2279_v21 = vld [vmem:[#allocation14 + $0xa0] ss:$8 sps:$4 sm:$0xff]   ;;  %v799_v24 = vsub.s32 5, %v2794_v16 }
 0x423   :  { %v748_v26 = vpack.c.bf16 %v663_v25, %v663_v25  ;;  %v2282_v23 = vld [vmem:[#allocation14 + $0xb0] ss:$8 sps:$4 sm:$0xff]   ;;  %v173_v25 = vld [vmem:[#allocation2 + $0x10] sm:$0xff] }
 0x425   :  { %1900 = vmatprep.mubr.msk.bf16.mxu0 %vm215_vm1, %v748_v26  ;;  %1901 = vmatprep.mubr.msk.bf16.mxu1 %vm215_vm1, %v748_v26  ;;  %v800_v26 = vrot.slane %v2799_v18, %v799_v24 }
 0x426   :  { %1037 = vmatmul.mubr.bf16.vlgmr.msra.gmra.mrb[12].mxu0 %v747_v28  ;;  %1078 = vmatmul.mubr.bf16.vlgmr.msra.gmra.mrb[8].mxu1 %v747_v28  ;;  %v804_v28 = vrot.slane %v2888_v9, %v799_v24 }
 0x427   :  { %1252 = vmatpush1.bf16.msra.mxu0 %v2189_v27  ;;  %1458 = vmatpush1.bf16.msra.mxu1 %v2249_v57  ;;  %v808_v27 = vrot.slane %v173_v25, %v799_v24  ;;  %v2234_v57 = vld [vmem:[#allocation16 + $0x48] ss:$12 sps:$4 sm:$0xff]  }
 0x428   :  { %1253 = vmatprep.subr.bf16.mxu0 %v2194_v29  ;;  %1459 = vmatprep.subr.bf16.mxu1 %v2254_v59  ;;  %v2237_v59 = vld [vmem:[#allocation16 + $0x60] ss:$12 sps:$4 sm:$0xff]  }
 0x42b   :  { %1254 = vmatpush1.bf16.msra.mxu0 %v2192_v30  ;;  %1460 = vmatpush1.bf16.msra.mxu1 %v2252_v60  ;;  %v674_v60 = vsub.s32 4, %v2794_v16 }
 0x42c   :  { %1255 = vmatprep.subr.bf16.mxu0 %v2197_v31  ;;  %1461 = vmatprep.subr.bf16.mxu1 %v2257_v61  ;;  %v2242_v61 = vld [vmem:[#allocation16 + $0x7c] ss:$12 sps:$4 sm:$0xff]  }
 0x42f   :  { %1256 = vmatpush1.bf16.msra.mxu0 %v2195_v33  ;;  %1462 = vmatpush1.bf16.msra.mxu1 %v2255_v62  ;;  %v2240_v62 = vld [vmem:[#allocation16 + $0x78] ss:$12 sps:$4 sm:$0xff]  }
 0x430   :  { %1257 = vmatprep.subr.bf16.mxu0 %v2200_v34  ;;  %1463 = vmatprep.subr.bf16.mxu1 %v2260_v63  ;;  %v2245_v63 = vld [vmem:[#allocation16 + $0x94] ss:$12 sps:$4 sm:$0xff]  }
 0x433   :  { %1258 = vmatpush1.bf16.msra.mxu0 %v2198_v35  ;;  %1464 = vmatpush1.bf16.msra.mxu1 %v2258_v1  ;;  %v2243_v1 = vld [vmem:[#allocation16 + $0x90] ss:$12 sps:$4 sm:$0xff]  }
 0x434   :  { %1259 = vmatprep.subr.bf16.mxu0 %v2203_v36  ;;  %1465 = vmatprep.subr.bf16.mxu1 %v2263_v2 }
 0x437   :  { %1260 = vmatpush1.bf16.msra.mxu0 %v2201_v37  ;;  %1466 = vmatpush1.bf16.msra.mxu1 %v2261_v3  ;;  %v2248_v3 = vld [vmem:[#allocation16 + $0xac] ss:$12 sps:$4 sm:$0xff]  }
 0x438   :  { %1261 = vmatprep.subr.bf16.mxu0 %v2206_v38  ;;  %1467 = vmatprep.subr.bf16.mxu1 %v2266_v4  ;;  %v2246_v4 = vld [vmem:[#allocation16 + $0xa8] ss:$12 sps:$4 sm:$0xff]  }
 0x43b   :  { %1262 = vmatpush1.bf16.msra.mxu0 %v2204_v39  ;;  %1468 = vmatpush1.bf16.msra.mxu1 %v2264_v5 }
 0x43c   :  { %1263 = vmatprep.subr.bf16.mxu0 %v2209_v40  ;;  %1469 = vmatprep.subr.bf16.mxu1 %v2269_v6 }
 0x43f   :  { %1264 = vmatpush1.bf16.msra.mxu0 %v2207_v41  ;;  %1470 = vmatpush1.bf16.msra.mxu1 %v2267_v7  ;;  %v2285_v7 = vld [vmem:[#allocation16 + $0x8] ss:$12 sps:$4 sm:$0xff]  }
 0x440   :  { %1265 = vmatprep.subr.bf16.mxu0 %v2212_v42  ;;  %1471 = vmatprep.subr.bf16.mxu1 %v2272_v8 }
 0x443   :  { %1266 = vmatpush1.bf16.msra.mxu0 %v2210_v43  ;;  %1472 = vmatpush1.bf16.msra.mxu1 %v2270_v11 }
 0x444   :  { %1267 = vmatprep.subr.bf16.mxu0 %v2215_v44  ;;  %1473 = vmatprep.subr.bf16.mxu1 %v2275_v12 }
 0x447   :  { %1268 = vmatpush1.bf16.msra.mxu0 %v2213_v45  ;;  %1474 = vmatpush1.bf16.msra.mxu1 %v2273_v14  ;;  %v2286_v14 = vld [vmem:[#allocation16 + $0x20] ss:$12 sps:$4 sm:$0xff]  }
 0x448   :  { %1269 = vmatprep.subr.bf16.mxu0 %v2218_v46  ;;  %1475 = vmatprep.subr.bf16.mxu1 %v2278_v15  ;;  %v2288_v15 = vld [vmem:[#allocation16 + $0x50] ss:$12 sps:$4 sm:$0xff]  }
 0x44b   :  { %1270 = vmatpush1.bf16.msra.mxu0 %v2216_v47  ;;  %1476 = vmatpush1.bf16.msra.mxu1 %v2276_v19  ;;  %v2289_v19 = vld [vmem:[#allocation16 + $0x68] ss:$12 sps:$4 sm:$0xff]  }
 0x44c   :  { %1271 = vmatprep.subr.bf16.mxu0 %v2221_v48  ;;  %1477 = vmatprep.subr.bf16.mxu1 %v2281_v20  ;;  %v2290_v20 = vld [vmem:[#allocation16 + $0x80] ss:$12 sps:$4 sm:$0xff]  }
 0x44f   :  { %1272 = vmatpush1.bf16.msra.mxu0 %v2219_v49  ;;  %1478 = vmatpush1.bf16.msra.mxu1 %v2279_v21  ;;  %v2225_v49 = vld [vmem:[#allocation16] ss:$12 sps:$4 sm:$0xff]   ;;  %v2291_v21 = vld [vmem:[#allocation16 + $0x98] ss:$12 sps:$4 sm:$0xff]  }
 0x450   :  { %1273 = vmatprep.subr.bf16.mxu0 %v2224_v50  ;;  %1479 = vmatprep.subr.bf16.mxu1 %v2284_v22  ;;  %v2292_v22 = vld [vmem:[#allocation16 + $0xb0] ss:$12 sps:$4 sm:$0xff]  }
 0x453   :  { %1274 = vmatpush1.bf16.msra.mxu0 %v2222_v51  ;;  %1480 = vmatpush1.bf16.msra.mxu1 %v2282_v23  ;;  %v2230_v51 = vld [vmem:[#allocation16 + $0x1c] ss:$12 sps:$4 sm:$0xff]  }
 0x454   :  { %1679 = vmatprep.subr.bf16.mxu0 %v2227_v52  ;;  %2039 = vmatprep.subr.bf16.mxu1 %v2566_v0  ;;  %v2228_v52 = vld [vmem:[#allocation16 + $0x18] ss:$12 sps:$4 sm:$0xff]  }
 0x48e   :  { %v2917_v53 = vpop.f32.mrb[8].mxu0 }
 0x48f   :  { %v2037_v54 = vpop.f32.mrb[9].mxu0 }
 0x490   :  { %v743_v55 = vpop.f32.mrb[10].mxu0  ;;  %v2233_v54 = vld [vmem:[#allocation16 + $0x34] ss:$12 sps:$4 sm:$0xff]  }
 0x491   :  { %v2038_v56 = vpop.f32.mrb[11].mxu0  ;;  %v2231_v55 = vld [vmem:[#allocation16 + $0x30] ss:$12 sps:$4 sm:$0xff]  }
 0x492   :  { %v2236_v56 = vld [vmem:[#allocation16 + $0x4c] ss:$12 sps:$4 sm:$0xff]  }
 0x4f9   :  { %v1038_v29 = vpop.f32.mrb[12].mxu0  ;;  %v1079_v30 = vpop.f32.mrb[8].mxu1 }
 0x4fa   :  { %v1039_v31 = vadd.f32 %v1038_v29, %v800_v26  ;;  %v1080_v33 = vadd.f32 %v1079_v30, %v808_v27  ;;  %v1040_v34 = vpop.f32.mrb[13].mxu0  ;;  %v1081_v35 = vpop.f32.mrb[9].mxu1 }
 0x4fb   :  { %v1041_v36 = vadd.f32 %v1040_v34, %v804_v28  ;;  %v1042_v37 = vpop.f32.mrb[14].mxu0  ;;  %v1082_v38 = vpop.f32.mrb[10].mxu1 }
 0x4fc   :  { %vm1085_vm8 = vcmp.ge.f32.partialorder %v1039_v31, 0.0  ;;  %v1088_v39 = vmul.f32 0.01, %v1039_v31  ;;  %v1043_v40 = vpop.f32.mrb[15].mxu0  ;;  %v1083_v41 = vpop.f32.mrb[11].mxu1  ;;  %vm1087_vm9 = vcmp.ge.f32.partialorder %v1080_v33, 0.0 }
 0x4fd   :  { %v1089_v42 = vmul.f32 0.01, %v1041_v36  ;;  %v1090_v43 = vmul.f32 0.01, %v1080_v33  ;;  %vm1086_vm10 = vcmp.ge.f32.partialorder %v1041_v36, 0.0 }
 0x4fe   :  { %v1091_v44 = vsel %vm1085_vm8, %v1039_v31, %v1088_v39  ;;  %v1319_v31 = vsub.s32 7, %v2794_v16  ;;  %v1498_v39 = vld [vmem:[%s2996_s1] sm:$0xff] }
 0x4ff   :  { %v1093_v45 = vsel %vm1087_vm9, %v1080_v33, %v1090_v43  ;;  %v1092_v46 = vsel %vm1086_vm10, %v1041_v36, %v1089_v42  ;;  %v1094_v50 = vpack.c.bf16 %v1091_v44, %v1091_v44  ;;  %v1122_v33 = vsub.s32 6, %v2794_v16  ;;  %v1499_v42 = vld [vmem:[%s2996_s1 + $0x8] sm:$0xff] }
 0x500   :  { %v1292_v47 = vpack.c.bf16 %v1093_v45, %v1093_v45  ;;  %v1095_v48 = vpack.c.bf16 %v1092_v46, %v1092_v46  ;;  %v1320_v34 = vrot.slane %v2799_v18, %v1319_v31  ;;  %v1324_v35 = vrot.slane %v2888_v9, %v1319_v31 }
 0x501   :  { %v1123_v36 = vrot.slane %v2799_v18, %v1122_v33  ;;  %v1127_v37 = vrot.slane %v2888_v9, %v1122_v33 }
 0x502   :  { %1329 = vrot.lane.b32.xlu1 %v1292_v47, %s3015_s11  ;;  %1327 = vrot.lane.b32.xlu0 %v1095_v48, %s3015_s11 }
 0x503   :  { %1926 = vmatprep.mubr.msk.bf16.mxu0 %vm215_vm1, %v1095_v48 }
 0x504   :  { %1284 = vmatmul.mubr.bf16.vlgmr.msra.gmra.mrb[16].mxu0 %v1094_v50  ;;  %v1546_v50 = vrot.slane %v2893_v13, %v2797_v17 }
 0x505   :  { %1680 = vmatpush1.bf16.msra.mxu0 %v2225_v49  ;;  %1711 = vmatprep.mubr.bf16.mxu0 %v2568_v32  ;;  %v675_v32 = vrot.slane %v2799_v18, %v674_v60  ;;  %v1542_v49 = vrot.slane %v2890_v10, %v2797_v17  ;;  %v1762_v10 = vld [vmem:[%s2997_s2 + $0x10] sm:$0xff] }
 0x506   :  { %1681 = vmatprep.subr.bf16.mxu0 %v2230_v51  ;;  %v176_v51 = vld [vmem:[#allocation2 + $0x28] sm:$0xff] }
 0x507   :  { %v741_v2 = vadd.f32 %v2917_v53, %v675_v32  ;;  %v2287_v53 = vld [vmem:[#allocation16 + $0x38] ss:$12 sps:$4 sm:$0xff]  }
 0x509   :  { %1682 = vmatpush1.bf16.msra.mxu0 %v2228_v52  ;;  %v746_v5 = vmax.f32 %v741_v2, 0.0 }
 0x50a   :  { %1683 = vmatprep.subr.bf16.mxu0 %v2233_v54 }
 0x50b   :  { %v1506_v6 = vpack.c.bf16 %v746_v5, %v746_v5 }
 0x50d   :  { %1684 = vmatpush1.bf16.msra.mxu0 %v2231_v55  ;;  %v1760_v55 = vld [vmem:[%s2997_s2] sm:$0xff] }
 0x50e   :  { %1685 = vmatprep.subr.bf16.mxu0 %v2236_v56  ;;  %v1761_v56 = vld [vmem:[%s2997_s2 + $0x8] sm:$0xff] }
 0x511   :  { %1686 = vmatpush1.bf16.msra.mxu0 %v2234_v57  ;;  %v1550_v57 = vrot.slane %v176_v51, %v2797_v17 }
 0x512   :  { %1687 = vmatprep.subr.bf16.mxu0 %v2239_v58 }
 0x515   :  { %1688 = vmatpush1.bf16.msra.mxu0 %v2237_v59 }
 0x516   :  { %1689 = vmatprep.subr.bf16.mxu0 %v2242_v61 }
 0x519   :  { %1690 = vmatpush1.bf16.msra.mxu0 %v2240_v62 }
 0x51a   :  { %1691 = vmatprep.subr.bf16.mxu0 %v2245_v63 }
 0x51d   :  { %1692 = vmatpush1.bf16.msra.mxu0 %v2243_v1 }
 0x51e   :  { %1693 = vmatprep.subr.bf16.mxu0 %v2248_v3 }
 0x521   :  { %1694 = vmatpush1.bf16.msra.mxu0 %v2246_v4 }
 0x524   :  { %1712 = vmatmul.mubr.bf16.vlgmr.msra.gmra.mrb[20].mxu0 %v1506_v6 }
 0x574   :  { %v1330_v8 = vpop.permute.xlu1 %1329  ;;  %v1328_v11 = vpop.permute.xlu0 %1327 }
 0x575   :  { %1951 = vmatprep.mubr.msk.bf16.mxu1 %vm215_vm1, %v1330_v8  ;;  %v1332_v12 = vsel %vm215_vm1, %v1328_v11, %v1330_v8 }
 0x576   :  { %1490 = vmatmul.mubr.bf16.vlgmr.msra.gmra.mrb[12].mxu1 %v1332_v12 }
 0x577   :  { %2040 = vmatpush3.bf16.msra.mxu1 %v2285_v7  ;;  %2055 = vmatprep.mubr.msk.bf16.mxu1 %vm2567_vm0, %v2566_v0 }
 0x578   :  { %2041 = vmatprep.subr.bf16.mxu1 %v2566_v0 }
 0x57b   :  { %2042 = vmatpush3.bf16.msra.mxu1 %v2286_v14 }
 0x57c   :  { %2043 = vmatprep.subr.bf16.mxu1 %v2566_v0 }
 0x57f   :  { %2044 = vmatpush3.bf16.msra.mxu1 %v2287_v53 }
 0x580   :  { %2045 = vmatprep.subr.bf16.mxu1 %v2566_v0 }
 0x583   :  { %2046 = vmatpush3.bf16.msra.mxu1 %v2288_v15 }
 0x584   :  { %2047 = vmatprep.subr.bf16.mxu1 %v2566_v0 }
 0x587   :  { %2048 = vmatpush3.bf16.msra.mxu1 %v2289_v19 }
 0x588   :  { %2049 = vmatprep.subr.bf16.mxu1 %v2566_v0 }
 0x58b   :  { %2050 = vmatpush3.bf16.msra.mxu1 %v2290_v20 }
 0x58c   :  { %2051 = vmatprep.subr.bf16.mxu1 %v2566_v0 }
 0x58f   :  { %2052 = vmatpush3.bf16.msra.mxu1 %v2291_v21 }
 0x590   :  { %2053 = vmatprep.subr.bf16.mxu1 %v2566_v0 }
 0x593   :  { %2054 = vmatpush3.bf16.msra.mxu1 %v2292_v22 }
 0x596   :  { %2056 = vmatmul.mubr.bf16.vlgmr.msra.gmra.mrb[16].mxu1 %v1506_v6 }
 0x5d7   :  { %v1285_v23 = vpop.f32.mrb[16].mxu0 }
 0x5d8   :  { %v1287_v24 = vpop.f32.mrb[17].mxu0  ;;  %v1286_v44 = vadd.f32 %v1285_v23, %v1123_v36 }
 0x5d9   :  { %v1289_v25 = vpop.f32.mrb[18].mxu0  ;;  %v1288_v47 = vadd.f32 %v1287_v24, %v1127_v37 }
 0x5da   :  { %v1290_v26 = vpop.f32.mrb[19].mxu0 }
 0x5f7   :  { %v1713_v27 = vpop.f32.mrb[20].mxu0 }
 0x5f8   :  { %v1715_v28 = vpop.f32.mrb[21].mxu0  ;;  %v1714_v52 = vadd.f32 %v1713_v27, %v1542_v49 }
 0x5f9   :  { %v1717_v29 = vpop.f32.mrb[22].mxu0  ;;  %v1716_v54 = vadd.f32 %v1715_v28, %v1546_v50 }
 0x5fa   :  { %v1718_v30 = vpop.f32.mrb[23].mxu0  ;;  %v1763_v58 = vadd.f32 %v1760_v55, %v1714_v52 }
 0x5fb   :  { %v1764_v59 = vadd.f32 %v1761_v56, %v1716_v54 }
 0x5fd   :  { %v1766_v1 = vmax.f32 %v1763_v58, %v1764_v59 }
 0x649   :  { %v1491_v38 = vpop.f32.mrb[12].mxu1 }
 0x64a   :  { %v1492_v40 = vadd.f32 %v1491_v38, %v1320_v34  ;;  %v1493_v41 = vpop.f32.mrb[13].mxu1 }
 0x64b   :  { %v1494_v16 = vadd.f32 %v1493_v41, %v1324_v35  ;;  %v1495_v43 = vpop.f32.mrb[14].mxu1 }
 0x64c   :  { %v1500_v45 = vmul.f32 %v1498_v39, %v1492_v40  ;;  %v1496_v46 = vpop.f32.mrb[15].mxu1 }
 0x64d   :  { %v1501_v18 = vmul.f32 %v1499_v42, %v1494_v16 }
 0x64e   :  { %v1502_v48 = vadd.f32 %v1500_v45, %v1286_v44 }
 0x64f   :  { %v1503_v9 = vadd.f32 %v1501_v18, %v1288_v47 }
 0x650   :  { %1504 = vst [vmem:[#allocation17] sm:$0xff] %v1502_v48 }
 0x651   :  { %1505 = vst.msk [vmem:[#allocation17 + $0x8] sm:$0xff] %vm215_vm1, %v1503_v9 }
 0x669   :  { %v1754_v60 = vpop.f32.mrb[16].mxu1 }
 0x66a   :  { %v1755_v13 = vadd.f32 %v1754_v60, %v1550_v57  ;;  %v2057_v61 = vpop.f32.mrb[17].mxu1 }
 0x66b   :  { %v1757_v62 = vpop.f32.mrb[18].mxu1 }
 0x66c   :  { %v1765_v32 = vadd.f32 %v1762_v10, %v1755_v13  ;;  %v2058_v63 = vpop.f32.mrb[19].mxu1 }
 0x66e   :  { %v1767_v2 = vmax.f32 %v1766_v1, %v1765_v32 }
 0x670   :  { %1768 = vmax.xlane.f32.xlu1 %v1767_v2 }
 0x671   :  { %2502 = shalt.err (!%p2499_p6)
}
 0x672   :  { %s2503_s26 = scalar_lea.hbm %s3008_s13, 256 }
 0x673   :  { %p2504_p7 = scmp.ne.s32.totalorder %s3008_s13, %s2503_s26  ;;  %p2507_p8 = scmp.lt.u32.totalorder %s2503_s26, %s3008_s13 }
 0x675   :  { %p2509_p9 = pnand %p2507_p8, %p2504_p7 }
 0x677   :  { %2512 = shalt.err (!%p2509_p9)
}
 0x678   :  { %1791 = dma.vmem_to_hbm [thread:$0]  %s1789_s22, 256, %s3008_s13, [#allocation4]  }
 0x679   :  { %s2570_s27 = smov [#allocation18]  }
 0x67a   :  { %s1798_s18 = sshll.u32 %s2570_s27, 4  ;;  %s1799_s18 = int_to_ptr.vmem [resolvable:$true] %s1798_s18 }
 0x67b   :  { %s2513_s3 = scalar_lea.vmem %s1799_s18, 384  ;;  %p2518_p11 = scmp.lt.s32.totalorder %s1799_s18, %s1799_s18 }
 0x67c   :  { %p2514_p10 = scmp.ne.s32.totalorder %s1799_s18, %s2513_s3  ;;  %p2519_p12 = scmp.lt.s32.totalorder %s2513_s3, %s2513_s3 }
 0x67e   :  { %p2520_p13 = por %p2519_p12, %p2518_p11 }
 0x680   :  { %p2521_p0 = pnand %p2520_p13, %p2514_p10 }
 0x6fd   :  { %v1769_v17 = vpop.xlane.xlu1 %1768 }
 0x6fe   :  { %vm1770_vm11 = vcmp.eq.f32.partialorder %v1763_v58, %v1769_v17  ;;  %vm1771_vm12 = vcmp.eq.f32.partialorder %v1764_v59, %v1769_v17  ;;  %vm1772_vm13 = vcmp.eq.f32.partialorder %v1765_v32, %v1769_v17 }
 0x6ff   :  { %v1976_v3 = vsel %vm1770_vm11, 1.0, %v2566_v0  ;;  %v1977_v4 = vsel %vm1771_vm12, 1.0, %v2566_v0  ;;  %v1978_v5 = vsel %vm1772_vm13, 1.0, %v2566_v0 }
 0x700   :  { %1779 = vst [vmem:[#allocation18] sm:$0xff] %v1976_v3  ;;  %1780 = vst [vmem:[#allocation18 + $0x8] sm:$0xff] %v1977_v4 }
 0x701   :  { %1781 = vst [vmem:[#allocation18 + $0x10] sm:$0xff] %v1978_v5 }
 0x702   :  { %2524 = shalt.err (!%p2521_p0)
}
 0x703   :  { %s2525_s21 = scalar_lea.hbm %s3009_s14, 384 }
 0x704   :  { %p2526_p1 = scmp.ne.s32.totalorder %s3009_s14, %s2525_s21  ;;  %p2529_p2 = scmp.lt.u32.totalorder %s2525_s21, %s3009_s14 }
 0x706   :  { %p2531_p3 = pnand %p2529_p2, %p2526_p1 }
 0x708   :  { %2534 = shalt.err (!%p2531_p3)
}
 0x709   :  { %1801 = dma.vmem_to_hbm [thread:$0]  %s1799_s18, 384, %s3009_s14, [#allocation19]  }
 0x70a   :  { %2545 = dma.done.wait [#allocation4], 256  }
 0x70b   :  { %2546 = vsyncadd [#allocation4], 4294967040 }
 0x70c   :  { %2547 = dma.done.wait [#allocation19], 384  }
 0x70d   :  { %2548 = vsyncadd [#allocation19], 4294966912 }
 0x70e   :  { %1808 = vsyncpa [#allocation3], 1 }
 0x70f   :  { %1809 = vsyncpa [#allocation6], 1 }
 0x710   :  { %1810 = vsyncpa [#allocation9], 1 }
 0x711   :  { %1811 = vsyncpa [#allocation12], 1 }
 0x712   :  { %1812 = vsyncpa [#allocation15], 1 }
 0x713   :  { %1813 = vsyncpa [#allocation4], 1 }
 0x714   :  { %1814 = vsyncpa [#allocation19], 1 }

</bundles_post_ra>
